<compile_context>
chip_gen: v6e
topology: v6e:2x2x1
jax: 0.10.0
libtpu: 0.0.40
codegen_flags: <defaults>
</compile_context>

<pallas_src>
import functools

import jax
import jax.numpy as jnp
from jax import lax
from jax.experimental import pallas as pl
from jax.experimental.pallas import tpu as pltpu

LANE = 128


def _round_up(n, m):
    return ((n + m - 1) // m) * m


def _lstm_kernel(x_ref, wih_ref, whh_ref, b_ref, wout_ref, bout_ref, out_ref):
    """LSTM recurrence + linear head for one batch block, resident in VMEM.

    x_ref    : (S, BB, I)   input sequences for this batch block (step-major)
    wih_ref  : (I, 4*HP)    input->gate weights, gate-padded & transposed
    whh_ref  : (HP, 4*HP)   hidden->gate weights, gate-padded & transposed
    b_ref    : (1, 4*HP)    combined bias (b_ih + b_hh), gate-padded, f32
    wout_ref : (HP, OP)     linear head weight, padded & transposed
    bout_ref : (1, OP)      linear head bias, padded, f32
    out_ref  : (BB, OP)     prediction for the last timestep (lane-dense)
    """
    S, BB, I = x_ref.shape
    HP, G4 = whh_ref.shape
    cdt = whh_ref.dtype            # MXU operand dtype (f32 or bf16)

    b = b_ref[...].astype(jnp.float32)          # (1, 4HP)
    whh = whh_ref[...]                          # (HP, 4HP), stays resident

    if I == 1:
        # Input projection for input_size==1 is an outer product -> do it on
        # the VPU as a broadcast multiply, per step (no (S,BB,4HP) slab).
        xall = x_ref[...].astype(jnp.float32)               # (S, BB, 1)
        wih = wih_ref[...].astype(jnp.float32)              # (1, 4HP)

        def xgate(t):
            return xall[t] * wih + b                        # (BB, 4HP)
    else:
        x2 = x_ref[...].reshape(S * BB, I).astype(cdt)
        xg = (jnp.dot(x2, wih_ref[...], preferred_element_type=jnp.float32)
              + b).reshape(S, BB, G4)

        def xgate(t):
            return xg[t]                                    # (BB, 4HP)

    # Fused gate nonlinearity: one tanh over the whole (BB, 4HP) gates vector.
    # i/f/o lanes: sigmoid(x) = 0.5*tanh(0.5*x) + 0.5 ; g lanes: tanh(x).
    lane = lax.broadcasted_iota(jnp.int32, (1, G4), 1)
    is_g = (lane >= 2 * HP) & (lane < 3 * HP)
    scale = jnp.where(is_g, 1.0, 0.5).astype(jnp.float32)   # pre- & post-mul
    shift = jnp.where(is_g, 0.0, 0.5).astype(jnp.float32)   # post-add

    h = jnp.zeros((BB, HP), jnp.float32)
    c = jnp.zeros((BB, HP), jnp.float32)

    # S is small and a compile-time constant -> fully unroll: static gate
    # slices stay lane-aligned and whh stays resident across steps.
    # TODO(synk): for long sequences switch to lax.fori_loop(..., unroll=k)
    # (or a "arbitrary" sequence grid axis) to bound code size / vreg ranges.
    for t in range(S):
        if t == 0:
            gates = xgate(0)                 # h0 == 0 -> skip the matmul
        else:
            gates = xgate(t) + jnp.dot(h.astype(cdt), whh,
                                       preferred_element_type=jnp.float32)
        acts = jnp.tanh(gates * scale) * scale + shift       # (BB, 4HP)
        i_g = acts[:, 0 * HP:1 * HP]
        f_g = acts[:, 1 * HP:2 * HP]
        g_g = acts[:, 2 * HP:3 * HP]
        o_g = acts[:, 3 * HP:4 * HP]
        if t == 0:
            c = i_g * g_g                    # c0 == 0 -> drop dead f*c term
        else:
            c = f_g * c + i_g * g_g
        h = o_g * jnp.tanh(c)

    # Padded hidden lanes stay exactly zero through the recurrence (their gate
    # pre-activations are 0 -> g = 0 -> c, h stay 0) and padded rows of wout
    # are zero, so the head output is exact.
    out_ref[...] = (
        jnp.dot(h.astype(cdt), wout_ref[...], preferred_element_type=jnp.float32)
        + bout_ref[...].astype(jnp.float32))


def _pad_gate_rows(w, H, HP):
    """(4H, ...) torch gate-major -> (4*HP, ...): gate k at rows [k*HP, k*HP+H)."""
    pad_tail = [(0, 0)] * (w.ndim - 1)
    parts = []
    for k in range(4):
        blk = w[k * H:(k + 1) * H]
        parts.append(jnp.pad(blk, [(0, HP - H)] + pad_tail))
    return jnp.concatenate(parts, axis=0)


def prepare_params(w_ih, w_hh, b_ih, b_hh, w_out, b_out, *,
                   param_dtype=jnp.float32):
    """One-time weight preprocessing (hoisted out of the per-call hot path).

    param_dtype=jnp.bfloat16 makes every MXU operand a single bf16 pass
    (good on v6e/v7x); biases always stay f32.
    Returns (params_tuple, H, O).
    """
    w_ih = jnp.asarray(w_ih, jnp.float32)
    w_hh = jnp.asarray(w_hh, jnp.float32)
    b = jnp.asarray(b_ih, jnp.float32) + jnp.asarray(b_hh, jnp.float32)
    w_out = jnp.asarray(w_out, jnp.float32)
    b_out = jnp.asarray(b_out, jnp.float32)

    H = w_hh.shape[1]
    O = w_out.shape[0]
    HP = _round_up(H, LANE)      # each gate gets a lane-aligned 128-wide block
    OP = _round_up(O, LANE)      # lane-dense output store (no vst.msk)

    wih_t = _pad_gate_rows(w_ih, H, HP).T                        # (I, 4HP)
    whh_t = jnp.pad(_pad_gate_rows(w_hh, H, HP),
                    ((0, 0), (0, HP - H))).T                     # (HP, 4HP)
    b_p = _pad_gate_rows(b[:, None], H, HP).reshape(1, 4 * HP)   # (1, 4HP)
    wout_t = jnp.pad(w_out, ((0, OP - O), (0, HP - H))).T        # (HP, OP)
    bout_p = jnp.pad(b_out, (0, OP - O)).reshape(1, OP)          # (1, OP)

    params = (wih_t.astype(param_dtype), whh_t.astype(param_dtype), b_p,
              wout_t.astype(param_dtype), bout_p)
    return params, H, O


@functools.partial(jax.jit, static_argnames=("H", "O", "block_b"))
def lstm_forward_batched(xb, params, *, H, O, block_b=8):
    """B independent sequences: xb (B, S) or (B, S, I) -> (B, O) f32."""
    assert block_b % 8 == 0, "batch block must be a multiple of the f32 sublane"
    wih_t, whh_t, b_p, wout_t, bout_p = params

    xb = jnp.asarray(xb, jnp.float32)
    if xb.ndim == 2:
        xb = xb[..., None]
    B, S, I = xb.shape
    HP, G4 = whh_t.shape
    OP = wout_t.shape[1]

    BB = block_b
    Bp = _round_up(B, BB)
    if Bp != B:
        xb = jnp.pad(xb, ((0, Bp - B), (0, 0), (0, 0)))
    # Step-major layout so each per-step (BB, 4HP) tile is contiguous.
    xs = jnp.transpose(xb, (1, 0, 2))                            # (S, Bp, I)
    nb = Bp // BB

    # TODO(synk): on v7x re-derive block sizes against 64 MiB VMEM (and set
    # vmem_limit_bytes) if S / BB are ever scaled far beyond these sizes.
    out = pl.pallas_call(
        _lstm_kernel,
        out_shape=jax.ShapeDtypeStruct((Bp, OP), jnp.float32),
        grid=(nb,),
        in_specs=[
            pl.BlockSpec((S, BB, I), lambda b: (0, b, 0)),   # x (batch-tiled)
            pl.BlockSpec((I, G4), lambda b: (0, 0)),         # wih (resident)
            pl.BlockSpec((HP, G4), lambda b: (0, 0)),        # whh (resident)
            pl.BlockSpec((1, G4), lambda b: (0, 0)),         # bias
            pl.BlockSpec((HP, OP), lambda b: (0, 0)),        # wout
            pl.BlockSpec((1, OP), lambda b: (0, 0)),         # bout
        ],
        out_specs=pl.BlockSpec((BB, OP), lambda b: (b, 0)),
        compiler_params=pltpu.CompilerParams(
            dimension_semantics=("parallel",)),              # both v7x TCs
    )(xs, wih_t, whh_t, b_p, wout_t, bout_p)
    return out[:B, :O]


def lstm_forward(x, params, *, H, O):
    """Module-semantics forward: one sequence x (S,) or (S, I) -> (O,) f32.

    Matches the PyTorch module (zero initial hidden/cell, predictions[-1]).
    """
    # TODO(synk): the torch module carries self.hidden_cell across calls; a
    # nonzero initial (h, c) input would be needed to mirror that statefulness.
    x = jnp.asarray(x, jnp.float32)
    if x.ndim == 1:
        x = x[:, None]
    return lstm_forward_batched(x[None], params, H=H, O=O)[0]


def _reference_single(x, w_ih, w_hh, b_ih, b_hh, w_out, b_out):
    """Pure-JAX reference mirroring torch.nn.LSTM + Linear, predictions[-1]."""
    if x.ndim == 1:
        x = x[:, None]
    H = w_hh.shape[1]
    h = jnp.zeros((H,), jnp.float32)
    c = jnp.zeros((H,), jnp.float32)
    for t in range(x.shape[0]):
        gates = w_ih @ x[t] + b_ih + w_hh @ h + b_hh
        i = jax.nn.sigmoid(gates[0 * H:1 * H])
        f = jax.nn.sigmoid(gates[1 * H:2 * H])
        g = jnp.tanh(gates[2 * H:3 * H])
        o = jax.nn.sigmoid(gates[3 * H:4 * H])
        c = f * c + i * g
        h = o * jnp.tanh(c)
    return w_out @ h + b_out


if __name__ == "__main__":
    SEQ = 8
    INPUT_SIZE = 1
    HIDDEN = 32
    OUTPUT_SIZE = 1
    BATCH = 16          # batched demo: two batch blocks of 8 -> grid=(2,)

    key = jax.random.PRNGKey(0)
    ks = jax.random.split(key, 8)

    # Deterministic parameter init, uniform(-1/sqrt(H), 1/sqrt(H)) like torch.
    k = 1.0 / jnp.sqrt(jnp.float32(HIDDEN))
    w_ih = jax.random.uniform(ks[0], (4 * HIDDEN, INPUT_SIZE), jnp.float32, -k, k)
    w_hh = jax.random.uniform(ks[1], (4 * HIDDEN, HIDDEN), jnp.float32, -k, k)
    b_ih = jax.random.uniform(ks[2], (4 * HIDDEN,), jnp.float32, -k, k)
    b_hh = jax.random.uniform(ks[3], (4 * HIDDEN,), jnp.float32, -k, k)
    w_out = jax.random.uniform(ks[4], (OUTPUT_SIZE, HIDDEN), jnp.float32, -k, k)
    b_out = jax.random.uniform(ks[5], (OUTPUT_SIZE,), jnp.float32, -k, k)

    # Weight preprocessing done ONCE, outside the per-call path.
    params_f32, H, O = prepare_params(w_ih, w_hh, b_ih, b_hh, w_out, b_out)
    jax.block_until_ready(params_f32)

    # --- module-semantics path: one sequence, predictions[-1] --------------
    x = jax.random.normal(ks[6], (SEQ,), jnp.float32)
    pred = jax.block_until_ready(lstm_forward(x, params_f32, H=H, O=O))
    ref = _reference_single(x, w_ih, w_hh, b_ih, b_hh, w_out, b_out)
    assert pred.shape == (OUTPUT_SIZE,)
    assert jnp.allclose(pred, ref, atol=1e-5, rtol=1e-5), (pred, ref)

    # --- batched path: B independent sequences, "parallel" batch grid ------
    xb = jax.random.normal(ks[7], (BATCH, SEQ), jnp.float32)
    preds = jax.block_until_ready(
        lstm_forward_batched(xb, params_f32, H=H, O=O))
    refs = jnp.stack([
        _reference_single(xb[i], w_ih, w_hh, b_ih, b_hh, w_out, b_out)
        for i in range(BATCH)])
    assert preds.shape == (BATCH, OUTPUT_SIZE)
    assert jnp.allclose(preds, refs, atol=1e-5, rtol=1e-5), (preds, refs)

    # --- bf16-weight variant (single bf16 MXU pass on v6e/v7x) -------------
    params_bf16, _, _ = prepare_params(w_ih, w_hh, b_ih, b_hh, w_out, b_out,
                                       param_dtype=jnp.bfloat16)
    preds_bf16 = jax.block_until_ready(
        lstm_forward_batched(xb, params_bf16, H=H, O=O))
    assert preds_bf16.shape == (BATCH, OUTPUT_SIZE)
    assert bool(jnp.all(jnp.isfinite(preds_bf16)))
    assert jnp.allclose(preds_bf16, refs, atol=1e-1, rtol=1e-1)

    print("KERNEL_OK")
</pallas_src>

<mosaic_0001>
module attributes {stable_mosaic.version = 11 : i64} {
  func.func @_lstm_kernel(%arg0: i32, %arg1: memref<8x8x1xf32, #tpu.memory_space<vmem>>, %arg2: memref<1x512xf32, #tpu.memory_space<vmem>>, %arg3: memref<128x512xf32, #tpu.memory_space<vmem>>, %arg4: memref<1x512xf32, #tpu.memory_space<vmem>>, %arg5: memref<128x128xf32, #tpu.memory_space<vmem>>, %arg6: memref<1x128xf32, #tpu.memory_space<vmem>>, %arg7: memref<8x128xf32, #tpu.memory_space<vmem>>) attributes {dimension_semantics = [#tpu.dimension_semantics<parallel>], iteration_bounds = array<i64: 1>, scalar_prefetch = 0 : i64, scratch_operands = 0 : i64, tpu.core_type = #tpu.core_type<tc>, window_params = [{transform_indices = @transform_0, window_bounds = array<i64: 8, 8, 1>}, {pipeline_mode = #tpu.pipeline_mode<synchronous>, transform_indices = @transform_1, window_bounds = array<i64: 1, 512>}, {pipeline_mode = #tpu.pipeline_mode<synchronous>, transform_indices = @transform_2, window_bounds = array<i64: 128, 512>}, {pipeline_mode = #tpu.pipeline_mode<synchronous>, transform_indices = @transform_3, window_bounds = array<i64: 1, 512>}, {pipeline_mode = #tpu.pipeline_mode<synchronous>, transform_indices = @transform_4, window_bounds = array<i64: 128, 128>}, {pipeline_mode = #tpu.pipeline_mode<synchronous>, transform_indices = @transform_5, window_bounds = array<i64: 1, 128>}, {transform_indices = @transform_6, window_bounds = array<i64: 8, 128>}]} {
    %c0 = arith.constant 0 : index
    %c0_0 = arith.constant 0 : index
    %0 = vector.load %arg4[%c0, %c0_0] : memref<1x512xf32, #tpu.memory_space<vmem>>, vector<1x512xf32>
    %c0_1 = arith.constant 0 : index
    %c0_2 = arith.constant 0 : index
    %1 = vector.load %arg3[%c0_1, %c0_2] : memref<128x512xf32, #tpu.memory_space<vmem>>, vector<128x512xf32>
    %c0_3 = arith.constant 0 : index
    %c0_4 = arith.constant 0 : index
    %c0_5 = arith.constant 0 : index
    %2 = vector.load %arg1[%c0_3, %c0_4, %c0_5] : memref<8x8x1xf32, #tpu.memory_space<vmem>>, vector<8x8x1xf32>
    %c0_6 = arith.constant 0 : index
    %c0_7 = arith.constant 0 : index
    %3 = vector.load %arg2[%c0_6, %c0_7] : memref<1x512xf32, #tpu.memory_space<vmem>>, vector<1x512xf32>
    %4 = tpu.iota {dimensions = array<i32: 1>} : vector<1x512xi32>
    %c256_i32 = arith.constant 256 : i32
    %5 = vector.broadcast %c256_i32 : i32 to vector<1x512xi32>
    %6 = arith.cmpi sge, %4, %5 : vector<1x512xi32>
    %c384_i32 = arith.constant 384 : i32
    %7 = vector.broadcast %c384_i32 : i32 to vector<1x512xi32>
    %8 = arith.cmpi slt, %4, %7 : vector<1x512xi32>
    %9 = arith.andi %6, %8 : vector<1x512xi1>
    %cst = arith.constant 1.000000e+00 : f32
    %cst_8 = arith.constant 5.000000e-01 : f32
    %10 = vector.broadcast %cst : f32 to vector<1x512xf32>
    %11 = vector.broadcast %cst_8 : f32 to vector<1x512xf32>
    %12 = arith.select %9, %10, %11 : vector<1x512xi1>, vector<1x512xf32>
    %cst_9 = arith.constant 0.000000e+00 : f32
    %cst_10 = arith.constant 5.000000e-01 : f32
    %13 = vector.broadcast %cst_9 : f32 to vector<1x512xf32>
    %14 = vector.broadcast %cst_10 : f32 to vector<1x512xf32>
    %15 = arith.select %9, %13, %14 : vector<1x512xi1>, vector<1x512xf32>
    %16 = vector.extract_strided_slice %2 {offsets = [0, 0, 0], sizes = [1, 8, 1], strides = [1, 1, 1]} : vector<8x8x1xf32> to vector<1x8x1xf32>
    %17 = vector.shape_cast %16 : vector<1x8x1xf32> to vector<8x1xf32>
    %18 = vector.broadcast %17 : vector<8x1xf32> to vector<8x512xf32>
    %19 = vector.broadcast %3 : vector<1x512xf32> to vector<8x512xf32>
    %20 = arith.mulf %18, %19 : vector<8x512xf32>
    %21 = vector.broadcast %0 : vector<1x512xf32> to vector<8x512xf32>
    %22 = arith.addf %20, %21 : vector<8x512xf32>
    %23 = vector.broadcast %12 : vector<1x512xf32> to vector<8x512xf32>
    %24 = arith.mulf %22, %23 : vector<8x512xf32>
    %25 = math.tanh %24 : vector<8x512xf32>
    %26 = vector.broadcast %12 : vector<1x512xf32> to vector<8x512xf32>
    %27 = arith.mulf %25, %26 : vector<8x512xf32>
    %28 = vector.broadcast %15 : vector<1x512xf32> to vector<8x512xf32>
    %29 = arith.addf %27, %28 : vector<8x512xf32>
    %30 = vector.extract_strided_slice %29 {offsets = [0, 0], sizes = [8, 128], strides = [1, 1]} : vector<8x512xf32> to vector<8x128xf32>
    %31 = vector.extract_strided_slice %29 {offsets = [0, 256], sizes = [8, 128], strides = [1, 1]} : vector<8x512xf32> to vector<8x128xf32>
    %32 = vector.extract_strided_slice %29 {offsets = [0, 384], sizes = [8, 128], strides = [1, 1]} : vector<8x512xf32> to vector<8x128xf32>
    %33 = arith.mulf %30, %31 : vector<8x128xf32>
    %34 = math.tanh %33 : vector<8x128xf32>
    %35 = arith.mulf %32, %34 : vector<8x128xf32>
    %36 = vector.extract_strided_slice %2 {offsets = [1, 0, 0], sizes = [1, 8, 1], strides = [1, 1, 1]} : vector<8x8x1xf32> to vector<1x8x1xf32>
    %37 = vector.shape_cast %36 : vector<1x8x1xf32> to vector<8x1xf32>
    %38 = vector.broadcast %37 : vector<8x1xf32> to vector<8x512xf32>
    %39 = vector.broadcast %3 : vector<1x512xf32> to vector<8x512xf32>
    %40 = arith.mulf %38, %39 : vector<8x512xf32>
    %41 = vector.broadcast %0 : vector<1x512xf32> to vector<8x512xf32>
    %42 = arith.addf %40, %41 : vector<8x512xf32>
    %cst_11 = arith.constant dense<0.000000e+00> : vector<8x512xf32>
    %43 = tpu.matmul %35, %1, %cst_11 {dimension_numbers = #tpu.dot_dimension_numbers<[1], [0], [0], [1], [0, 0, 1, 1], [], []>} : vector<8x128xf32>, vector<128x512xf32>, vector<8x512xf32> -> vector<8x512xf32>
    %44 = arith.addf %42, %43 : vector<8x512xf32>
    %45 = vector.broadcast %12 : vector<1x512xf32> to vector<8x512xf32>
    %46 = arith.mulf %44, %45 : vector<8x512xf32>
    %47 = math.tanh %46 : vector<8x512xf32>
    %48 = vector.broadcast %12 : vector<1x512xf32> to vector<8x512xf32>
    %49 = arith.mulf %47, %48 : vector<8x512xf32>
    %50 = vector.broadcast %15 : vector<1x512xf32> to vector<8x512xf32>
    %51 = arith.addf %49, %50 : vector<8x512xf32>
    %52 = vector.extract_strided_slice %51 {offsets = [0, 0], sizes = [8, 128], strides = [1, 1]} : vector<8x512xf32> to vector<8x128xf32>
    %53 = vector.extract_strided_slice %51 {offsets = [0, 128], sizes = [8, 128], strides = [1, 1]} : vector<8x512xf32> to vector<8x128xf32>
    %54 = vector.extract_strided_slice %51 {offsets = [0, 256], sizes = [8, 128], strides = [1, 1]} : vector<8x512xf32> to vector<8x128xf32>
    %55 = vector.extract_strided_slice %51 {offsets = [0, 384], sizes = [8, 128], strides = [1, 1]} : vector<8x512xf32> to vector<8x128xf32>
    %56 = arith.mulf %53, %33 : vector<8x128xf32>
    %57 = arith.mulf %52, %54 : vector<8x128xf32>
    %58 = arith.addf %56, %57 : vector<8x128xf32>
    %59 = math.tanh %58 : vector<8x128xf32>
    %60 = arith.mulf %55, %59 : vector<8x128xf32>
    %61 = vector.extract_strided_slice %2 {offsets = [2, 0, 0], sizes = [1, 8, 1], strides = [1, 1, 1]} : vector<8x8x1xf32> to vector<1x8x1xf32>
    %62 = vector.shape_cast %61 : vector<1x8x1xf32> to vector<8x1xf32>
    %63 = vector.broadcast %62 : vector<8x1xf32> to vector<8x512xf32>
    %64 = vector.broadcast %3 : vector<1x512xf32> to vector<8x512xf32>
    %65 = arith.mulf %63, %64 : vector<8x512xf32>
    %66 = vector.broadcast %0 : vector<1x512xf32> to vector<8x512xf32>
    %67 = arith.addf %65, %66 : vector<8x512xf32>
    %cst_12 = arith.constant dense<0.000000e+00> : vector<8x512xf32>
    %68 = tpu.matmul %60, %1, %cst_12 {dimension_numbers = #tpu.dot_dimension_numbers<[1], [0], [0], [1], [0, 0, 1, 1], [], []>} : vector<8x128xf32>, vector<128x512xf32>, vector<8x512xf32> -> vector<8x512xf32>
    %69 = arith.addf %67, %68 : vector<8x512xf32>
    %70 = vector.broadcast %12 : vector<1x512xf32> to vector<8x512xf32>
    %71 = arith.mulf %69, %70 : vector<8x512xf32>
    %72 = math.tanh %71 : vector<8x512xf32>
    %73 = vector.broadcast %12 : vector<1x512xf32> to vector<8x512xf32>
    %74 = arith.mulf %72, %73 : vector<8x512xf32>
    %75 = vector.broadcast %15 : vector<1x512xf32> to vector<8x512xf32>
    %76 = arith.addf %74, %75 : vector<8x512xf32>
    %77 = vector.extract_strided_slice %76 {offsets = [0, 0], sizes = [8, 128], strides = [1, 1]} : vector<8x512xf32> to vector<8x128xf32>
    %78 = vector.extract_strided_slice %76 {offsets = [0, 128], sizes = [8, 128], strides = [1, 1]} : vector<8x512xf32> to vector<8x128xf32>
    %79 = vector.extract_strided_slice %76 {offsets = [0, 256], sizes = [8, 128], strides = [1, 1]} : vector<8x512xf32> to vector<8x128xf32>
    %80 = vector.extract_strided_slice %76 {offsets = [0, 384], sizes = [8, 128], strides = [1, 1]} : vector<8x512xf32> to vector<8x128xf32>
    %81 = arith.mulf %78, %58 : vector<8x128xf32>
    %82 = arith.mulf %77, %79 : vector<8x128xf32>
    %83 = arith.addf %81, %82 : vector<8x128xf32>
    %84 = math.tanh %83 : vector<8x128xf32>
    %85 = arith.mulf %80, %84 : vector<8x128xf32>
    %86 = vector.extract_strided_slice %2 {offsets = [3, 0, 0], sizes = [1, 8, 1], strides = [1, 1, 1]} : vector<8x8x1xf32> to vector<1x8x1xf32>
    %87 = vector.shape_cast %86 : vector<1x8x1xf32> to vector<8x1xf32>
    %88 = vector.broadcast %87 : vector<8x1xf32> to vector<8x512xf32>
    %89 = vector.broadcast %3 : vector<1x512xf32> to vector<8x512xf32>
    %90 = arith.mulf %88, %89 : vector<8x512xf32>
    %91 = vector.broadcast %0 : vector<1x512xf32> to vector<8x512xf32>
    %92 = arith.addf %90, %91 : vector<8x512xf32>
    %cst_13 = arith.constant dense<0.000000e+00> : vector<8x512xf32>
    %93 = tpu.matmul %85, %1, %cst_13 {dimension_numbers = #tpu.dot_dimension_numbers<[1], [0], [0], [1], [0, 0, 1, 1], [], []>} : vector<8x128xf32>, vector<128x512xf32>, vector<8x512xf32> -> vector<8x512xf32>
    %94 = arith.addf %92, %93 : vector<8x512xf32>
    %95 = vector.broadcast %12 : vector<1x512xf32> to vector<8x512xf32>
    %96 = arith.mulf %94, %95 : vector<8x512xf32>
    %97 = math.tanh %96 : vector<8x512xf32>
    %98 = vector.broadcast %12 : vector<1x512xf32> to vector<8x512xf32>
    %99 = arith.mulf %97, %98 : vector<8x512xf32>
    %100 = vector.broadcast %15 : vector<1x512xf32> to vector<8x512xf32>
    %101 = arith.addf %99, %100 : vector<8x512xf32>
    %102 = vector.extract_strided_slice %101 {offsets = [0, 0], sizes = [8, 128], strides = [1, 1]} : vector<8x512xf32> to vector<8x128xf32>
    %103 = vector.extract_strided_slice %101 {offsets = [0, 128], sizes = [8, 128], strides = [1, 1]} : vector<8x512xf32> to vector<8x128xf32>
    %104 = vector.extract_strided_slice %101 {offsets = [0, 256], sizes = [8, 128], strides = [1, 1]} : vector<8x512xf32> to vector<8x128xf32>
    %105 = vector.extract_strided_slice %101 {offsets = [0, 384], sizes = [8, 128], strides = [1, 1]} : vector<8x512xf32> to vector<8x128xf32>
    %106 = arith.mulf %103, %83 : vector<8x128xf32>
    %107 = arith.mulf %102, %104 : vector<8x128xf32>
    %108 = arith.addf %106, %107 : vector<8x128xf32>
    %109 = math.tanh %108 : vector<8x128xf32>
    %110 = arith.mulf %105, %109 : vector<8x128xf32>
    %111 = vector.extract_strided_slice %2 {offsets = [4, 0, 0], sizes = [1, 8, 1], strides = [1, 1, 1]} : vector<8x8x1xf32> to vector<1x8x1xf32>
    %112 = vector.shape_cast %111 : vector<1x8x1xf32> to vector<8x1xf32>
    %113 = vector.broadcast %112 : vector<8x1xf32> to vector<8x512xf32>
    %114 = vector.broadcast %3 : vector<1x512xf32> to vector<8x512xf32>
    %115 = arith.mulf %113, %114 : vector<8x512xf32>
    %116 = vector.broadcast %0 : vector<1x512xf32> to vector<8x512xf32>
    %117 = arith.addf %115, %116 : vector<8x512xf32>
    %cst_14 = arith.constant dense<0.000000e+00> : vector<8x512xf32>
    %118 = tpu.matmul %110, %1, %cst_14 {dimension_numbers = #tpu.dot_dimension_numbers<[1], [0], [0], [1], [0, 0, 1, 1], [], []>} : vector<8x128xf32>, vector<128x512xf32>, vector<8x512xf32> -> vector<8x512xf32>
    %119 = arith.addf %117, %118 : vector<8x512xf32>
    %120 = vector.broadcast %12 : vector<1x512xf32> to vector<8x512xf32>
    %121 = arith.mulf %119, %120 : vector<8x512xf32>
    %122 = math.tanh %121 : vector<8x512xf32>
    %123 = vector.broadcast %12 : vector<1x512xf32> to vector<8x512xf32>
    %124 = arith.mulf %122, %123 : vector<8x512xf32>
    %125 = vector.broadcast %15 : vector<1x512xf32> to vector<8x512xf32>
    %126 = arith.addf %124, %125 : vector<8x512xf32>
    %127 = vector.extract_strided_slice %126 {offsets = [0, 0], sizes = [8, 128], strides = [1, 1]} : vector<8x512xf32> to vector<8x128xf32>
    %128 = vector.extract_strided_slice %126 {offsets = [0, 128], sizes = [8, 128], strides = [1, 1]} : vector<8x512xf32> to vector<8x128xf32>
    %129 = vector.extract_strided_slice %126 {offsets = [0, 256], sizes = [8, 128], strides = [1, 1]} : vector<8x512xf32> to vector<8x128xf32>
    %130 = vector.extract_strided_slice %126 {offsets = [0, 384], sizes = [8, 128], strides = [1, 1]} : vector<8x512xf32> to vector<8x128xf32>
    %131 = arith.mulf %128, %108 : vector<8x128xf32>
    %132 = arith.mulf %127, %129 : vector<8x128xf32>
    %133 = arith.addf %131, %132 : vector<8x128xf32>
    %134 = math.tanh %133 : vector<8x128xf32>
    %135 = arith.mulf %130, %134 : vector<8x128xf32>
    %136 = vector.extract_strided_slice %2 {offsets = [5, 0, 0], sizes = [1, 8, 1], strides = [1, 1, 1]} : vector<8x8x1xf32> to vector<1x8x1xf32>
    %137 = vector.shape_cast %136 : vector<1x8x1xf32> to vector<8x1xf32>
    %138 = vector.broadcast %137 : vector<8x1xf32> to vector<8x512xf32>
    %139 = vector.broadcast %3 : vector<1x512xf32> to vector<8x512xf32>
    %140 = arith.mulf %138, %139 : vector<8x512xf32>
    %141 = vector.broadcast %0 : vector<1x512xf32> to vector<8x512xf32>
    %142 = arith.addf %140, %141 : vector<8x512xf32>
    %cst_15 = arith.constant dense<0.000000e+00> : vector<8x512xf32>
    %143 = tpu.matmul %135, %1, %cst_15 {dimension_numbers = #tpu.dot_dimension_numbers<[1], [0], [0], [1], [0, 0, 1, 1], [], []>} : vector<8x128xf32>, vector<128x512xf32>, vector<8x512xf32> -> vector<8x512xf32>
    %144 = arith.addf %142, %143 : vector<8x512xf32>
    %145 = vector.broadcast %12 : vector<1x512xf32> to vector<8x512xf32>
    %146 = arith.mulf %144, %145 : vector<8x512xf32>
    %147 = math.tanh %146 : vector<8x512xf32>
    %148 = vector.broadcast %12 : vector<1x512xf32> to vector<8x512xf32>
    %149 = arith.mulf %147, %148 : vector<8x512xf32>
    %150 = vector.broadcast %15 : vector<1x512xf32> to vector<8x512xf32>
    %151 = arith.addf %149, %150 : vector<8x512xf32>
    %152 = vector.extract_strided_slice %151 {offsets = [0, 0], sizes = [8, 128], strides = [1, 1]} : vector<8x512xf32> to vector<8x128xf32>
    %153 = vector.extract_strided_slice %151 {offsets = [0, 128], sizes = [8, 128], strides = [1, 1]} : vector<8x512xf32> to vector<8x128xf32>
    %154 = vector.extract_strided_slice %151 {offsets = [0, 256], sizes = [8, 128], strides = [1, 1]} : vector<8x512xf32> to vector<8x128xf32>
    %155 = vector.extract_strided_slice %151 {offsets = [0, 384], sizes = [8, 128], strides = [1, 1]} : vector<8x512xf32> to vector<8x128xf32>
    %156 = arith.mulf %153, %133 : vector<8x128xf32>
    %157 = arith.mulf %152, %154 : vector<8x128xf32>
    %158 = arith.addf %156, %157 : vector<8x128xf32>
    %159 = math.tanh %158 : vector<8x128xf32>
    %160 = arith.mulf %155, %159 : vector<8x128xf32>
    %161 = vector.extract_strided_slice %2 {offsets = [6, 0, 0], sizes = [1, 8, 1], strides = [1, 1, 1]} : vector<8x8x1xf32> to vector<1x8x1xf32>
    %162 = vector.shape_cast %161 : vector<1x8x1xf32> to vector<8x1xf32>
    %163 = vector.broadcast %162 : vector<8x1xf32> to vector<8x512xf32>
    %164 = vector.broadcast %3 : vector<1x512xf32> to vector<8x512xf32>
    %165 = arith.mulf %163, %164 : vector<8x512xf32>
    %166 = vector.broadcast %0 : vector<1x512xf32> to vector<8x512xf32>
    %167 = arith.addf %165, %166 : vector<8x512xf32>
    %cst_16 = arith.constant dense<0.000000e+00> : vector<8x512xf32>
    %168 = tpu.matmul %160, %1, %cst_16 {dimension_numbers = #tpu.dot_dimension_numbers<[1], [0], [0], [1], [0, 0, 1, 1], [], []>} : vector<8x128xf32>, vector<128x512xf32>, vector<8x512xf32> -> vector<8x512xf32>
    %169 = arith.addf %167, %168 : vector<8x512xf32>
    %170 = vector.broadcast %12 : vector<1x512xf32> to vector<8x512xf32>
    %171 = arith.mulf %169, %170 : vector<8x512xf32>
    %172 = math.tanh %171 : vector<8x512xf32>
    %173 = vector.broadcast %12 : vector<1x512xf32> to vector<8x512xf32>
    %174 = arith.mulf %172, %173 : vector<8x512xf32>
    %175 = vector.broadcast %15 : vector<1x512xf32> to vector<8x512xf32>
    %176 = arith.addf %174, %175 : vector<8x512xf32>
    %177 = vector.extract_strided_slice %176 {offsets = [0, 0], sizes = [8, 128], strides = [1, 1]} : vector<8x512xf32> to vector<8x128xf32>
    %178 = vector.extract_strided_slice %176 {offsets = [0, 128], sizes = [8, 128], strides = [1, 1]} : vector<8x512xf32> to vector<8x128xf32>
    %179 = vector.extract_strided_slice %176 {offsets = [0, 256], sizes = [8, 128], strides = [1, 1]} : vector<8x512xf32> to vector<8x128xf32>
    %180 = vector.extract_strided_slice %176 {offsets = [0, 384], sizes = [8, 128], strides = [1, 1]} : vector<8x512xf32> to vector<8x128xf32>
    %181 = arith.mulf %178, %158 : vector<8x128xf32>
    %182 = arith.mulf %177, %179 : vector<8x128xf32>
    %183 = arith.addf %181, %182 : vector<8x128xf32>
    %184 = math.tanh %183 : vector<8x128xf32>
    %185 = arith.mulf %180, %184 : vector<8x128xf32>
    %186 = vector.extract_strided_slice %2 {offsets = [7, 0, 0], sizes = [1, 8, 1], strides = [1, 1, 1]} : vector<8x8x1xf32> to vector<1x8x1xf32>
    %187 = vector.shape_cast %186 : vector<1x8x1xf32> to vector<8x1xf32>
    %188 = vector.broadcast %187 : vector<8x1xf32> to vector<8x512xf32>
    %189 = vector.broadcast %3 : vector<1x512xf32> to vector<8x512xf32>
    %190 = arith.mulf %188, %189 : vector<8x512xf32>
    %191 = vector.broadcast %0 : vector<1x512xf32> to vector<8x512xf32>
    %192 = arith.addf %190, %191 : vector<8x512xf32>
    %cst_17 = arith.constant dense<0.000000e+00> : vector<8x512xf32>
    %193 = tpu.matmul %185, %1, %cst_17 {dimension_numbers = #tpu.dot_dimension_numbers<[1], [0], [0], [1], [0, 0, 1, 1], [], []>} : vector<8x128xf32>, vector<128x512xf32>, vector<8x512xf32> -> vector<8x512xf32>
    %194 = arith.addf %192, %193 : vector<8x512xf32>
    %195 = vector.broadcast %12 : vector<1x512xf32> to vector<8x512xf32>
    %196 = arith.mulf %194, %195 : vector<8x512xf32>
    %197 = math.tanh %196 : vector<8x512xf32>
    %198 = vector.broadcast %12 : vector<1x512xf32> to vector<8x512xf32>
    %199 = arith.mulf %197, %198 : vector<8x512xf32>
    %200 = vector.broadcast %15 : vector<1x512xf32> to vector<8x512xf32>
    %201 = arith.addf %199, %200 : vector<8x512xf32>
    %202 = vector.extract_strided_slice %201 {offsets = [0, 0], sizes = [8, 128], strides = [1, 1]} : vector<8x512xf32> to vector<8x128xf32>
    %203 = vector.extract_strided_slice %201 {offsets = [0, 128], sizes = [8, 128], strides = [1, 1]} : vector<8x512xf32> to vector<8x128xf32>
    %204 = vector.extract_strided_slice %201 {offsets = [0, 256], sizes = [8, 128], strides = [1, 1]} : vector<8x512xf32> to vector<8x128xf32>
    %205 = vector.extract_strided_slice %201 {offsets = [0, 384], sizes = [8, 128], strides = [1, 1]} : vector<8x512xf32> to vector<8x128xf32>
    %206 = arith.mulf %203, %183 : vector<8x128xf32>
    %207 = arith.mulf %202, %204 : vector<8x128xf32>
    %208 = arith.addf %206, %207 : vector<8x128xf32>
    %209 = math.tanh %208 : vector<8x128xf32>
    %210 = arith.mulf %205, %209 : vector<8x128xf32>
    %c0_18 = arith.constant 0 : index
    %c0_19 = arith.constant 0 : index
    %211 = vector.load %arg5[%c0_18, %c0_19] : memref<128x128xf32, #tpu.memory_space<vmem>>, vector<128x128xf32>
    %cst_20 = arith.constant dense<0.000000e+00> : vector<8x128xf32>
    %212 = tpu.matmul %210, %211, %cst_20 {dimension_numbers = #tpu.dot_dimension_numbers<[1], [0], [0], [1], [0, 0, 1, 1], [], []>} : vector<8x128xf32>, vector<128x128xf32>, vector<8x128xf32> -> vector<8x128xf32>
    %c0_21 = arith.constant 0 : index
    %c0_22 = arith.constant 0 : index
    %213 = vector.load %arg6[%c0_21, %c0_22] : memref<1x128xf32, #tpu.memory_space<vmem>>, vector<1x128xf32>
    %214 = vector.broadcast %213 : vector<1x128xf32> to vector<8x128xf32>
    %215 = arith.addf %212, %214 : vector<8x128xf32>
    %c0_23 = arith.constant 0 : index
    %c0_24 = arith.constant 0 : index
    %216 = vector.load %arg7[%c0_23, %c0_24] : memref<8x128xf32, #tpu.memory_space<vmem>>, vector<8x128xf32>
    tpu.vector_store %arg7[%c0_23, %c0_24], %215 {strides = array<i32>} : memref<8x128xf32, #tpu.memory_space<vmem>>, vector<8x128xf32>,
    return
  }
  func.func @transform_0(%arg0: i32) -> (i32, i32, i32) {
    %c0_i32 = arith.constant 0 : i32
    %c0_i32_0 = arith.constant 0 : i32
    %c0_i32_1 = arith.constant 0 : i32
    return %c0_i32, %arg0, %c0_i32_0 : i32, i32, i32
  }
  func.func @transform_1(%arg0: i32) -> (i32, i32) {
    %c0_i32 = arith.constant 0 : i32
    %c0_i32_0 = arith.constant 0 : i32
    %c0_i32_1 = arith.constant 0 : i32
    return %c0_i32, %c0_i32_0 : i32, i32
  }
  func.func @transform_2(%arg0: i32) -> (i32, i32) {
    %c0_i32 = arith.constant 0 : i32
    %c0_i32_0 = arith.constant 0 : i32
    %c0_i32_1 = arith.constant 0 : i32
    return %c0_i32, %c0_i32_0 : i32, i32
  }
  func.func @transform_3(%arg0: i32) -> (i32, i32) {
    %c0_i32 = arith.constant 0 : i32
    %c0_i32_0 = arith.constant 0 : i32
    %c0_i32_1 = arith.constant 0 : i32
    return %c0_i32, %c0_i32_0 : i32, i32
  }
  func.func @transform_4(%arg0: i32) -> (i32, i32) {
    %c0_i32 = arith.constant 0 : i32
    %c0_i32_0 = arith.constant 0 : i32
    %c0_i32_1 = arith.constant 0 : i32
    return %c0_i32, %c0_i32_0 : i32, i32
  }
  func.func @transform_5(%arg0: i32) -> (i32, i32) {
    %c0_i32 = arith.constant 0 : i32
    %c0_i32_0 = arith.constant 0 : i32
    %c0_i32_1 = arith.constant 0 : i32
    return %c0_i32, %c0_i32_0 : i32, i32
  }
  func.func @transform_6(%arg0: i32) -> (i32, i32) {
    %c0_i32 = arith.constant 0 : i32
    %c0_i32_0 = arith.constant 0 : i32
    return %arg0, %c0_i32 : i32, i32
  }
}

</mosaic_0001>

<bundles_post_ra>
// kernel: lstm_forward_batched.1
= control target key start
LH: loop header
LB: loop body
LE: loop exit
PB: predicated region body
PF: predicated region fallthrough
CT: control target
= control target key end

     0   :  { %11 = vsyncpa [#allocation3], 0  ;;  %s2773_s0 = inlined_call_operand.vmem [shape: f32[8,8,1], index: 0, kind: input, shape index: {}]   ;;  %s2774_s1 = inlined_call_operand.vmem [shape: f32[1,512], index: 1, kind: input, shape index: {}]   ;;  %s2775_s2 = inlined_call_operand.hbm [shape: f32[128,512], index: 2, kind: input, shape index: {}]   ;;  %s2776_s3 = inlined_call_operand.vmem [shape: f32[1,512], index: 3, kind: input, shape index: {}]   ;;  %s2777_s4 = inlined_call_operand.hbm [shape: f32[128,128], index: 4, kind: input, shape index: {}]   ;;  %s2778_s5 = inlined_call_operand.vmem [shape: f32[1,128], index: 5, kind: input, shape index: {}]   ;;  %s2779_s6 = inlined_call_operand.vmem [shape: f32[8,128], index: 6, kind: output, shape index: {}]  }
   0x1   :  { %12 = vsyncpa [#allocation5], 0  ;;  %s1828_s21 = smov [#allocation2]  }
   0x2   :  { %s22_s22 = sshll.u32 %s1828_s21, 4  ;;  %s23_s22 = int_to_ptr.vmem [resolvable:$true] %s22_s22 }
   0x3   :  { %s1792_s23 = scalar_lea.vmem %s23_s22, 8192  ;;  %p1797_p1 = scmp.lt.s32.totalorder %s23_s22, %s23_s22 }
   0x4   :  { %p1793_p0 = scmp.ne.s32.totalorder %s23_s22, %s1792_s23  ;;  %p1798_p2 = scmp.lt.s32.totalorder %s1792_s23, %s1792_s23 }
   0x6   :  { %p1799_p3 = por %p1798_p2, %p1797_p1 }
   0x8   :  { %p1800_p4 = pnand %p1799_p3, %p1793_p0 }
   0xa   :  { %1803 = shalt.err (!%p1800_p4)
}
   0xb   :  { %s1829_s24 = smov 512   ;;  %s1830_s25 = smov 32  }
   0xc   :  { %28 = dma.hbm_to_vmem [thread:$0]  %s2775_s2, 8192, %s23_s22, [#allocation3], %s1829_s24, %s1829_s24, %s1830_s25  }
   0xd   :  { %s1831_s28 = smov [#allocation4]  }
   0xe   :  { %s36_s29 = sshll.u32 %s1831_s28, 4  ;;  %s37_s29 = int_to_ptr.vmem [resolvable:$true] %s36_s29 }
   0xf   :  { %s1812_s30 = scalar_lea.vmem %s37_s29, 2048  ;;  %p1817_p6 = scmp.lt.s32.totalorder %s37_s29, %s37_s29 }
  0x10   :  { %p1813_p5 = scmp.ne.s32.totalorder %s37_s29, %s1812_s30  ;;  %p1818_p7 = scmp.lt.s32.totalorder %s1812_s30, %s1812_s30 }
  0x12   :  { %p1819_p8 = por %p1818_p7, %p1817_p6 }
  0x14   :  { %p1820_p9 = pnand %p1819_p8, %p1813_p5 }
  0x16   :  { %1823 = shalt.err (!%p1820_p9)
}
  0x17   :  { %s1832_s7 = smov 128   ;;  %s1833_s8 = smov 8  }
  0x18   :  { %42 = dma.hbm_to_vmem [thread:$0]  %s2777_s4, 2048, %s37_s29, [#allocation5], %s1832_s7, %s1832_s7, %s1833_s8  }
  0x19   :  { %1824 = dma.done.wait [#allocation3], 8192  }
  0x1a   :  { %1825 = vsyncadd [#allocation3], 4294959104 }
  0x1b   :  { %1826 = dma.done.wait [#allocation5], 2048  }
  0x1c   :  { %1827 = vsyncadd [#allocation5], 4294965248  ;;  %v156_v0 = vlaneseq  ;;  %v1834_v1 = vmov 0   ;;  %v116_v4 = vld [vmem:[%s2773_s0] sm:$0xff]  ;;  %v117_v5 = vld [vmem:[%s2773_s0 + $0x8] sm:$0xff]  ;;  %vm1836_vm0 = vmmov 0  }
  0x1d   :  { %1640 = vset.pattern.permute.xlu0 %v1834_v1  ;;  %1641 = vset.pattern.permute.xlu1 %v1834_v1  ;;  %v1890_v6 = vld [vmem:[%s2774_s1] sm:$0xf]  ;;  %v1906_v11 = vld [vmem:[#allocation2 + $0x1e8] sm:$0xff]  ;;  %v1908_v12 = vld [vmem:[#allocation2 + $0x1f8] sm:$0xff] }
  0x1e   :  { %v1878_v2 = vshrl.u32 %v156_v0, 7  ;;  %152 = vperm.xlu0 %1640, %v116_v4   ;;  %v1895_v7 = vld [vmem:[%s2776_s3] sm:$0xf]  ;;  %2870 = vst [vmem:[#allocation10_spill] sm:$0xff] %v1906_v11  ;;  %2871 = vst [vmem:[#allocation11_spill] sm:$0xff] %v1908_v12  ;;  %231 = vmatprep.subr.mxu0 %v1906_v11  ;;  %v1914_v14 = vld [vmem:[#allocation2 + $0x1f0] sm:$0xff] }
  0x1f   :  { %v120_v10 = vld [vmem:[%s2773_s0 + $0x20] sm:$0xff]  ;;  %302 = vmatprep.subr.mxu1 %v1908_v12  ;;  %v1917_v15 = vld [vmem:[#allocation2 + $0x1c8] sm:$0xff]  ;;  %v1919_v16 = vld [vmem:[#allocation2 + $0x1d8] sm:$0xff] }
  0x20   :  { %v162_v3 = vsub.s32 1, %v1878_v2  ;;  %v1912_v13 = vld [vmem:[#allocation2 + $0x1e0] sm:$0xff]  ;;  %v122_v17 = vld [vmem:[%s2773_s0 + $0x30] sm:$0xff]  ;;  %303 = vmatpush1.msra.mxu1 %v1914_v14  ;;  %v1932_v20 = vld [vmem:[#allocation2 + $0x1a8] sm:$0xff] }
  0x21   :  { %232 = vmatpush1.msra.mxu0 %v1912_v13  ;;  %v1926_v18 = vld [vmem:[#allocation2 + $0x1c0] sm:$0xff]  ;;  %v1928_v19 = vld [vmem:[#allocation2 + $0x1d0] sm:$0xff]  ;;  %304 = vmatprep.subr.mxu1 %v1919_v16  ;;  %v1934_v21 = vld [vmem:[#allocation2 + $0x1b8] sm:$0xff] }
  0x22   :  { %v1898_v8 = vrot.slane %v1890_v6, %v162_v3  ;;  %v1901_v9 = vrot.slane %v1895_v7, %v162_v3  ;;  %220 = vperm.xlu0 %1640, %v117_v5   ;;  %233 = vmatprep.subr.mxu0 %v1917_v15  ;;  %v1938_v22 = vld [vmem:[#allocation2 + $0x1a0] sm:$0xff]  ;;  %v1940_v23 = vld [vmem:[#allocation2 + $0x1b0] sm:$0xff]  ;;  %v1943_v24 = vld [vmem:[#allocation2 + $0x188] sm:$0xff] }
  0x23   :  { %234 = vmatpush1.msra.mxu0 %v1926_v18  ;;  %305 = vmatpush1.msra.mxu1 %v1928_v19  ;;  %v1945_v25 = vld [vmem:[#allocation2 + $0x198] sm:$0xff]  ;;  %v1949_v26 = vld [vmem:[#allocation2 + $0x180] sm:$0xff]  ;;  %v1951_v27 = vld [vmem:[#allocation2 + $0x190] sm:$0xff] }
  0x24   :  { %2868 = vst [vmem:[#allocation8_spill] sm:$0xff] %v1898_v8  ;;  %2869 = vst [vmem:[#allocation9_spill] sm:$0xff] %v1901_v9  ;;  %235 = vmatprep.subr.mxu0 %v1932_v20  ;;  %306 = vmatprep.subr.mxu1 %v1934_v21  ;;  %v1955_v28 = vld [vmem:[#allocation2 + $0x168] sm:$0xff]  ;;  %v1957_v29 = vld [vmem:[#allocation2 + $0x178] sm:$0xff] }
  0x25   :  { %236 = vmatpush1.msra.mxu0 %v1938_v22  ;;  %307 = vmatpush1.msra.mxu1 %v1940_v23  ;;  %v1961_v30 = vld [vmem:[#allocation2 + $0x160] sm:$0xff]  ;;  %v1963_v31 = vld [vmem:[#allocation2 + $0x170] sm:$0xff]  ;;  %v1967_v32 = vld [vmem:[#allocation2 + $0x148] sm:$0xff] }
  0x26   :  { %760 = vperm.xlu0 %1640, %v120_v10   ;;  %237 = vmatprep.subr.mxu0 %v1943_v24  ;;  %v1969_v33 = vld [vmem:[#allocation2 + $0x158] sm:$0xff]  ;;  %v1973_v34 = vld [vmem:[#allocation2 + $0x140] sm:$0xff]  ;;  %v1975_v35 = vld [vmem:[#allocation2 + $0x150] sm:$0xff] }
  0x27   :  { %308 = vmatprep.subr.mxu1 %v1945_v25  ;;  %238 = vmatpush1.msra.mxu0 %v1949_v26  ;;  %v1979_v36 = vld [vmem:[#allocation2 + $0x128] sm:$0xff]  ;;  %v1981_v37 = vld [vmem:[#allocation2 + $0x138] sm:$0xff]  ;;  %v1985_v38 = vld [vmem:[#allocation2 + $0x120] sm:$0xff] }
  0x28   :  { %309 = vmatpush1.msra.mxu1 %v1951_v27  ;;  %239 = vmatprep.subr.mxu0 %v1955_v28  ;;  %v1987_v39 = vld [vmem:[#allocation2 + $0x130] sm:$0xff]  ;;  %v1991_v40 = vld [vmem:[#allocation2 + $0x108] sm:$0xff]  ;;  %v1993_v41 = vld [vmem:[#allocation2 + $0x118] sm:$0xff] }
  0x29   :  { %310 = vmatprep.subr.mxu1 %v1957_v29  ;;  %240 = vmatpush1.msra.mxu0 %v1961_v30  ;;  %v1997_v42 = vld [vmem:[#allocation2 + $0x100] sm:$0xff]  ;;  %v1999_v43 = vld [vmem:[#allocation2 + $0x110] sm:$0xff]  ;;  %v2003_v44 = vld [vmem:[#allocation2 + $0xe8] sm:$0xff] }
  0x2a   :  { %1120 = vperm.xlu0 %1640, %v122_v17   ;;  %311 = vmatpush1.msra.mxu1 %v1963_v31  ;;  %v2005_v45 = vld [vmem:[#allocation2 + $0xf8] sm:$0xff]  ;;  %v2007_v46 = vld [vmem:[#allocation2 + $0xe0] sm:$0xff]  ;;  %v2011_v47 = vld [vmem:[#allocation2 + $0xf0] sm:$0xff] }
  0x2b   :  { %241 = vmatprep.subr.mxu0 %v1967_v32  ;;  %312 = vmatprep.subr.mxu1 %v1969_v33  ;;  %v2013_v48 = vld [vmem:[#allocation2 + $0xc8] sm:$0xff]  ;;  %v2015_v49 = vld [vmem:[#allocation2 + $0xd8] sm:$0xff]  ;;  %v2019_v50 = vld [vmem:[#allocation2 + $0xc0] sm:$0xff] }
  0x2c   :  { %242 = vmatpush1.msra.mxu0 %v1973_v34  ;;  %313 = vmatpush1.msra.mxu1 %v1975_v35  ;;  %v2021_v51 = vld [vmem:[#allocation2 + $0xd0] sm:$0xff]  ;;  %v2025_v52 = vld [vmem:[#allocation2 + $0xa8] sm:$0xff]  ;;  %v2027_v53 = vld [vmem:[#allocation2 + $0xb8] sm:$0xff] }
  0x2d   :  { %243 = vmatprep.subr.mxu0 %v1979_v36  ;;  %314 = vmatprep.subr.mxu1 %v1981_v37  ;;  %v2031_v54 = vld [vmem:[#allocation2 + $0xa0] sm:$0xff]  ;;  %v2033_v55 = vld [vmem:[#allocation2 + $0xb0] sm:$0xff]  ;;  %v2037_v56 = vld [vmem:[#allocation2 + $0x88] sm:$0xff] }
  0x2e   :  { %244 = vmatpush1.msra.mxu0 %v1985_v38  ;;  %315 = vmatpush1.msra.mxu1 %v1987_v39  ;;  %2872 = vst [vmem:[#allocation12_spill] sm:$0xff] %v2031_v54  ;;  %2873 = vst [vmem:[#allocation13_spill] sm:$0xff] %v2033_v55  ;;  %v2039_v57 = vld [vmem:[#allocation2 + $0x98] sm:$0xff]  ;;  %v2043_v58 = vld [vmem:[#allocation2 + $0x80] sm:$0xff] }
  0x2f   :  { %245 = vmatprep.subr.mxu0 %v1991_v40  ;;  %316 = vmatprep.subr.mxu1 %v1993_v41  ;;  %2874 = vst [vmem:[#allocation14_spill] sm:$0xff] %v2037_v56  ;;  %2875 = vst [vmem:[#allocation15_spill] sm:$0xff] %v2039_v57  ;;  %v2045_v59 = vld [vmem:[#allocation2 + $0x90] sm:$0xff]  ;;  %v2049_v60 = vld [vmem:[#allocation2 + $0x68] sm:$0xff] }
  0x30   :  { %246 = vmatpush1.msra.mxu0 %v1997_v42  ;;  %317 = vmatpush1.msra.mxu1 %v1999_v43  ;;  %2876 = vst [vmem:[#allocation16_spill] sm:$0xff] %v2043_v58  ;;  %2877 = vst [vmem:[#allocation17_spill] sm:$0xff] %v2045_v59  ;;  %v2051_v61 = vld [vmem:[#allocation2 + $0x78] sm:$0xff]  ;;  %v2055_v62 = vld [vmem:[#allocation2 + $0x60] sm:$0xff] }
  0x31   :  { %247 = vmatprep.subr.mxu0 %v2003_v44  ;;  %318 = vmatprep.subr.mxu1 %v2005_v45  ;;  %2878 = vst [vmem:[#allocation18_spill] sm:$0xff] %v2049_v60  ;;  %2879 = vst [vmem:[#allocation19_spill] sm:$0xff] %v2051_v61  ;;  %v2057_v63 = vld [vmem:[#allocation2 + $0x70] sm:$0xff]  ;;  %v2061_v0 = vld [vmem:[#allocation2 + $0x48] sm:$0xff] }
  0x32   :  { %248 = vmatpush1.msra.mxu0 %v2007_v46  ;;  %319 = vmatpush1.msra.mxu1 %v2011_v47  ;;  %2880 = vst [vmem:[#allocation20_spill] sm:$0xff] %v2055_v62  ;;  %2881 = vst [vmem:[#allocation21_spill] sm:$0xff] %v2057_v63  ;;  %v2063_v1 = vld [vmem:[#allocation2 + $0x58] sm:$0xff]  ;;  %v2067_v3 = vld [vmem:[#allocation2 + $0x40] sm:$0xff] }
  0x33   :  { %249 = vmatprep.subr.mxu0 %v2013_v48  ;;  %320 = vmatprep.subr.mxu1 %v2015_v49  ;;  %2882 = vst [vmem:[#allocation22_spill] sm:$0xff] %v2061_v0  ;;  %2883 = vst [vmem:[#allocation23_spill] sm:$0xff] %v2063_v1  ;;  %v2069_v4 = vld [vmem:[#allocation2 + $0x50] sm:$0xff]  ;;  %v2073_v5 = vld [vmem:[#allocation2 + $0x28] sm:$0xff] }
  0x34   :  { %250 = vmatpush1.msra.mxu0 %v2019_v50  ;;  %321 = vmatpush1.msra.mxu1 %v2021_v51  ;;  %2884 = vst [vmem:[#allocation24_spill] sm:$0xff] %v2067_v3  ;;  %2885 = vst [vmem:[#allocation25_spill] sm:$0xff] %v2069_v4  ;;  %v2075_v10 = vld [vmem:[#allocation2 + $0x38] sm:$0xff]  ;;  %v2079_v17 = vld [vmem:[#allocation2 + $0x20] sm:$0xff] }
  0x35   :  { %251 = vmatprep.subr.mxu0 %v2025_v52  ;;  %322 = vmatprep.subr.mxu1 %v2027_v53  ;;  %2886 = vst [vmem:[#allocation26_spill] sm:$0xff] %v2073_v5  ;;  %2887 = vst [vmem:[#allocation27_spill] sm:$0xff] %v2075_v10  ;;  %v2081_v9 = vld [vmem:[#allocation2 + $0x30] sm:$0xff]  ;;  %v2085_v8 = vld [vmem:[#allocation2 + $0x8] sm:$0xff] }
  0x36   :  { %252 = vmatpush1.msra.mxu0 %v2031_v54  ;;  %323 = vmatpush1.msra.mxu1 %v2033_v55  ;;  %2888 = vst [vmem:[#allocation28_spill] sm:$0xff] %v2079_v17  ;;  %2889 = vst [vmem:[#allocation29_spill] sm:$0xff] %v2081_v9 }
  0x37   :  { %253 = vmatprep.subr.mxu0 %v2037_v56  ;;  %324 = vmatprep.subr.mxu1 %v2039_v57  ;;  %2890 = vst [vmem:[#allocation30_spill] sm:$0xff] %v2085_v8 }
  0x38   :  { %254 = vmatpush1.msra.mxu0 %v2043_v58  ;;  %325 = vmatpush1.msra.mxu1 %v2045_v59 }
  0x39   :  { %255 = vmatprep.subr.mxu0 %v2049_v60  ;;  %326 = vmatprep.subr.mxu1 %v2051_v61 }
  0x3a   :  { %256 = vmatpush1.msra.mxu0 %v2055_v62  ;;  %327 = vmatpush1.msra.mxu1 %v2057_v63  ;;  %v2087_v62 = vld [vmem:[#allocation2 + $0x18] sm:$0xff]  ;;  %v2091_v63 = vld [vmem:[#allocation2] sm:$0xff] }
  0x3b   :  { %257 = vmatprep.subr.mxu0 %v2061_v0  ;;  %328 = vmatprep.subr.mxu1 %v2063_v1  ;;  %2891 = vst [vmem:[#allocation31_spill] sm:$0xff] %v2087_v62  ;;  %2892 = vst [vmem:[#allocation32_spill] sm:$0xff] %v2091_v63  ;;  %v2095_v1 = vld [vmem:[#allocation2 + $0x10] sm:$0xff] }
  0x3c   :  { %258 = vmatpush1.msra.mxu0 %v2067_v3  ;;  %329 = vmatpush1.msra.mxu1 %v2069_v4  ;;  %2893 = vst [vmem:[#allocation33_spill] sm:$0xff] %v2095_v1  ;;  %v2802_v4 = vmov 0.0  }
  0x3d   :  { %259 = vmatprep.subr.mxu0 %v2073_v5  ;;  %330 = vmatprep.subr.mxu1 %v2075_v10 }
  0x3e   :  { %260 = vmatpush1.msra.mxu0 %v2079_v17  ;;  %331 = vmatpush1.msra.mxu1 %v2081_v9  ;;  %v158_v9 = vsub.s32 0, %v1878_v2  ;;  %v166_v17 = vsub.s32 2, %v1878_v2 }
  0x3f   :  { %261 = vmatprep.subr.mxu0 %v2085_v8  ;;  %332 = vmatprep.subr.mxu1 %v2087_v62  ;;  %v170_v62 = vsub.s32 3, %v1878_v2 }
  0x40   :  { %262 = vmatpush1.msra.mxu0 %v2091_v63  ;;  %295 = vmatprep.mubr.f32.mxu0 %v2802_v4  ;;  %v2108_v8 = vrot.slane %v1890_v6, %v158_v9  ;;  %v2111_v63 = vrot.slane %v1890_v6, %v166_v17  ;;  %v2123_v5 = vrot.slane %v1895_v7, %v166_v17 }
  0x41   :  { %333 = vmatpush1.msra.mxu1 %v2095_v1  ;;  %366 = vmatprep.mubr.f32.mxu1 %v2802_v4  ;;  %v2115_v1 = vrot.slane %v1895_v7, %v158_v9  ;;  %v2128_v2 = vrot.slane %v1895_v7, %v170_v62 }
  0x42   :  { %411 = vmatprep.subr.mxu0 %v1906_v11  ;;  %482 = vmatprep.subr.mxu1 %v1908_v12  ;;  %2894 = vst [vmem:[#allocation34_spill] sm:$0xff] %v2108_v8  ;;  %2895 = vst [vmem:[#allocation35_spill] sm:$0xff] %v2111_v63  ;;  %v2119_v12 = vrot.slane %v1890_v6, %v170_v62 }
  0x43   :  { %2896 = vst [vmem:[#allocation36_spill] sm:$0xff] %v2115_v1 }
  0x99   :  { %v153_v4 = vpop.permute.xlu0 %152 }
  0x9a   :  { %v176_v11 = vmul.f32 %v2108_v8, %v153_v4  ;;  %v177_v10 = vmul.f32 %v2111_v63, %v153_v4  ;;  %v178_v61 = vmul.f32 %v2119_v12, %v153_v4 }
  0x9c   :  { %v200_v3 = vadd.f32 %v2115_v1, %v176_v11  ;;  %v201_v9 = vadd.f32 %v2123_v5, %v177_v10  ;;  %v202_v8 = vadd.f32 %v2128_v2, %v178_v61  ;;  %v2900_v61 = vld [vmem:[#allocation19_spill] sm:$0xff]  ;;  %v2903_v10 = vld [vmem:[#allocation22_spill] sm:$0xff] }
  0x9e   :  { %v203_v0 = vmul.f32 0.5, %v200_v3  ;;  %v205_v6 = vmul.f32 0.5, %v202_v8  ;;  %v2897_v8 = vld [vmem:[#allocation16_spill] sm:$0xff] }
  0xa0   :  { %1642 = vtanh.f32 %v203_v0  ;;  %v2902_v0 = vld [vmem:[#allocation21_spill] sm:$0xff] }
  0xa1   :  { %1644 = vtanh.f32 %v201_v9  ;;  %v2904_v9 = vld [vmem:[#allocation23_spill] sm:$0xff] }
  0xa2   :  { %1646 = vtanh.f32 %v205_v6  ;;  %v2905_v6 = vld [vmem:[#allocation24_spill] sm:$0xff] }
  0xad   :  { %v1643_v63 = vpop.eup %1642 }
  0xae   :  { %v209_v60 = vmul.f32 0.5, %v1643_v63  ;;  %v1645_v59 = vpop.eup %1644  ;;  %v2901_v63 = vld [vmem:[#allocation20_spill] sm:$0xff] }
  0xaf   :  { %v1647_v11 = vpop.eup %1646 }
  0xb0   :  { %v212_v17 = vadd.f32 0.5, %v209_v60  ;;  %v211_v3 = vmul.f32 0.5, %v1647_v11  ;;  %v2899_v60 = vld [vmem:[#allocation18_spill] sm:$0xff] }
  0xb1   :  { %v2907_v11 = vld [vmem:[#allocation26_spill] sm:$0xff] }
  0xb2   :  { %v2132_v58 = vmul.f32 %v1645_v59, %v212_v17  ;;  %v214_v7 = vadd.f32 0.5, %v211_v3  ;;  %v2898_v59 = vld [vmem:[#allocation17_spill] sm:$0xff]  ;;  %v2908_v3 = vld [vmem:[#allocation27_spill] sm:$0xff] }
  0xb3   :  { %v2906_v17 = vld [vmem:[#allocation25_spill] sm:$0xff] }
  0xb4   :  { %1648 = vtanh.f32 %v2132_v58 }
  0xc1   :  { %v1649_v62 = vpop.eup %1648 }
  0xc2   :  { %v217_v4 = vmul.f32 %v1649_v62, %v214_v7  ;;  %v2909_v7 = vld [vmem:[#allocation28_spill] sm:$0xff]  ;;  %v2910_v62 = vld [vmem:[#allocation29_spill] sm:$0xff] }
  0xc4   :  { %296 = vmatmul.mubr.f32.vlgmr.msra.gmra.mxu0 %v217_v4  ;;  %367 = vmatmul.mubr.f32.vlgmr.msra.gmra.mxu1 %v217_v4  ;;  %v2911_v4 = vld [vmem:[#allocation30_spill] sm:$0xff] }
  0xc5   :  { %412 = vmatpush1.msra.mxu0 %v1912_v13  ;;  %483 = vmatpush1.msra.mxu1 %v1914_v14 }
  0xc6   :  { %413 = vmatprep.subr.mxu0 %v1917_v15  ;;  %484 = vmatprep.subr.mxu1 %v1919_v16 }
  0xc7   :  { %414 = vmatpush1.msra.mxu0 %v1926_v18  ;;  %485 = vmatpush1.msra.mxu1 %v1928_v19 }
  0xc8   :  { %415 = vmatprep.subr.mxu0 %v1932_v20  ;;  %486 = vmatprep.subr.mxu1 %v1934_v21 }
  0xc9   :  { %416 = vmatpush1.msra.mxu0 %v1938_v22  ;;  %487 = vmatpush1.msra.mxu1 %v1940_v23 }
  0xca   :  { %417 = vmatprep.subr.mxu0 %v1943_v24  ;;  %488 = vmatprep.subr.mxu1 %v1945_v25 }
  0xcb   :  { %418 = vmatpush1.msra.mxu0 %v1949_v26  ;;  %489 = vmatpush1.msra.mxu1 %v1951_v27 }
  0xcc   :  { %419 = vmatprep.subr.mxu0 %v1955_v28  ;;  %490 = vmatprep.subr.mxu1 %v1957_v29 }
  0xcd   :  { %420 = vmatpush1.msra.mxu0 %v1961_v30  ;;  %491 = vmatpush1.msra.mxu1 %v1963_v31 }
  0xce   :  { %421 = vmatprep.subr.mxu0 %v1967_v32  ;;  %492 = vmatprep.subr.mxu1 %v1969_v33 }
  0xcf   :  { %422 = vmatpush1.msra.mxu0 %v1973_v34  ;;  %493 = vmatpush1.msra.mxu1 %v1975_v35 }
  0xd0   :  { %423 = vmatprep.subr.mxu0 %v1979_v36  ;;  %494 = vmatprep.subr.mxu1 %v1981_v37 }
  0xd1   :  { %424 = vmatpush1.msra.mxu0 %v1985_v38  ;;  %495 = vmatpush1.msra.mxu1 %v1987_v39 }
  0xd2   :  { %425 = vmatprep.subr.mxu0 %v1991_v40  ;;  %496 = vmatprep.subr.mxu1 %v1993_v41 }
  0xd3   :  { %426 = vmatpush1.msra.mxu0 %v1997_v42  ;;  %497 = vmatpush1.msra.mxu1 %v1999_v43 }
  0xd4   :  { %427 = vmatprep.subr.mxu0 %v2003_v44  ;;  %498 = vmatprep.subr.mxu1 %v2005_v45 }
  0xd5   :  { %428 = vmatpush1.msra.mxu0 %v2007_v46  ;;  %499 = vmatpush1.msra.mxu1 %v2011_v47 }
  0xd6   :  { %429 = vmatprep.subr.mxu0 %v2013_v48  ;;  %500 = vmatprep.subr.mxu1 %v2015_v49 }
  0xd7   :  { %430 = vmatpush1.msra.mxu0 %v2019_v50  ;;  %501 = vmatpush1.msra.mxu1 %v2021_v51 }
  0xd8   :  { %431 = vmatprep.subr.mxu0 %v2025_v52  ;;  %502 = vmatprep.subr.mxu1 %v2027_v53 }
  0xd9   :  { %432 = vmatpush1.msra.mxu0 %v2031_v54  ;;  %503 = vmatpush1.msra.mxu1 %v2033_v55 }
  0xda   :  { %433 = vmatprep.subr.mxu0 %v2037_v56  ;;  %504 = vmatprep.subr.mxu1 %v2039_v57 }
  0xdb   :  { %434 = vmatpush1.msra.mxu0 %v2897_v8  ;;  %505 = vmatpush1.msra.mxu1 %v2898_v59 }
  0xdc   :  { %435 = vmatprep.subr.mxu0 %v2899_v60  ;;  %506 = vmatprep.subr.mxu1 %v2900_v61  ;;  %v2921_v60 = vld [vmem:[#allocation9_spill] sm:$0xff] }
  0xdd   :  { %436 = vmatpush1.msra.mxu0 %v2901_v63  ;;  %507 = vmatpush1.msra.mxu1 %v2902_v0  ;;  %v2912_v63 = vld [vmem:[#allocation31_spill] sm:$0xff]  ;;  %v2913_v0 = vld [vmem:[#allocation32_spill] sm:$0xff] }
  0xde   :  { %437 = vmatprep.subr.mxu0 %v2903_v10  ;;  %508 = vmatprep.subr.mxu1 %v2904_v9  ;;  %v2914_v10 = vmov 0.0   ;;  %v2915_v9 = vld [vmem:[#allocation33_spill] sm:$0xff] }
  0xdf   :  { %438 = vmatpush1.msra.mxu0 %v2905_v6  ;;  %509 = vmatpush1.msra.mxu1 %v2906_v17  ;;  %v2916_v17 = vld [vmem:[#allocation10_spill] sm:$0xff] }
  0xe0   :  { %439 = vmatprep.subr.mxu0 %v2907_v11  ;;  %510 = vmatprep.subr.mxu1 %v2908_v3  ;;  %v2917_v11 = vld [vmem:[#allocation11_spill] sm:$0xff] }
  0xe1   :  { %440 = vmatpush1.msra.mxu0 %v2909_v7  ;;  %511 = vmatpush1.msra.mxu1 %v2910_v62  ;;  %v118_v62 = vld [vmem:[%s2773_s0 + $0x10] sm:$0xff] }
  0xe2   :  { %441 = vmatprep.subr.mxu0 %v2911_v4  ;;  %512 = vmatprep.subr.mxu1 %v2912_v63  ;;  %v119_v63 = vld [vmem:[%s2773_s0 + $0x18] sm:$0xff]  ;;  %v2919_v4 = vld [vmem:[#allocation8_spill] sm:$0xff] }
  0xe3   :  { %442 = vmatpush1.msra.mxu0 %v2913_v0  ;;  %475 = vmatprep.mubr.f32.mxu0 %v2914_v10 }
  0xe4   :  { %513 = vmatpush1.msra.mxu1 %v2915_v9  ;;  %546 = vmatprep.mubr.f32.mxu1 %v2914_v10  ;;  %v121_v9 = vld [vmem:[%s2773_s0 + $0x28] sm:$0xff]  ;;  %v2918_v10 = vld [vmem:[#allocation34_spill] sm:$0xff] }
  0xe5   :  { %591 = vmatprep.subr.mxu0 %v2916_v17  ;;  %662 = vmatprep.subr.mxu1 %v2917_v11  ;;  %v123_v17 = vld [vmem:[%s2773_s0 + $0x38] sm:$0xff]  ;;  %v221_v11 = vpop.permute.xlu0 %220 }
  0xe6   :  { %400 = vperm.xlu1 %1641, %v118_v62   ;;  %v223_v0 = vmul.f32 %v221_v11, %v2918_v10  ;;  %v224_v62 = vmul.f32 %v221_v11, %v2919_v4  ;;  %v226_v4 = vmul.f32 %v221_v11, %v2119_v12 }
  0xe8   :  { %v227_v7 = vadd.f32 %v223_v0, %v2115_v1  ;;  %v228_v59 = vadd.f32 %v224_v62, %v2921_v60  ;;  %v230_v0 = vadd.f32 %v226_v4, %v2128_v2 }
  0xea   :  { %580 = vperm.xlu1 %1641, %v119_v63   ;;  %v2920_v63 = vld [vmem:[#allocation35_spill] sm:$0xff] }
  0xeb   :  { %v225_v61 = vmul.f32 %v221_v11, %v2920_v63 }
  0xee   :  { %940 = vperm.xlu1 %1641, %v121_v9  }
  0xf2   :  { %1300 = vperm.xlu1 %1641, %v123_v17   ;;  %v229_v17 = vadd.f32 %v225_v61, %v2123_v5 }
 0x184   :  { %v297_v3 = vpop.f32.mrf.mxu0  ;;  %v368_v56 = vpop.f32.mrf.mxu1 }
 0x185   :  { %v373_v6 = vadd.f32 %v297_v3, %v227_v7  ;;  %v375_v54 = vadd.f32 %v368_v56, %v229_v17  ;;  %v2925_v17 = vld [vmem:[#allocation15_spill] sm:$0xff] }
 0x186   :  { %v299_v8 = vpop.f32.mrf.mxu0  ;;  %v370_v10 = vpop.f32.mrf.mxu1 }
 0x187   :  { %v377_v9 = vmul.f32 0.5, %v373_v6  ;;  %v374_v57 = vadd.f32 %v299_v8, %v228_v59  ;;  %v376_v3 = vadd.f32 %v370_v10, %v230_v0  ;;  %v2926_v0 = vld [vmem:[#allocation16_spill] sm:$0xff] }
 0x189   :  { %1650 = vtanh.f32 %v377_v9  ;;  %v378_v55 = vmul.f32 0.5, %v374_v57  ;;  %v380_v7 = vmul.f32 0.5, %v376_v3  ;;  %v2927_v3 = vld [vmem:[#allocation17_spill] sm:$0xff] }
 0x18b   :  { %1652 = vtanh.f32 %v378_v55 }
 0x18c   :  { %1654 = vtanh.f32 %v375_v54 }
 0x18d   :  { %1656 = vtanh.f32 %v380_v7  ;;  %v2928_v7 = vld [vmem:[#allocation18_spill] sm:$0xff] }
 0x196   :  { %v1651_v63 = vpop.eup %1650 }
 0x197   :  { %v385_v62 = vmul.f32 0.5, %v1651_v63  ;;  %v2924_v63 = vld [vmem:[#allocation14_spill] sm:$0xff] }
 0x198   :  { %v1653_v60 = vpop.eup %1652 }
 0x199   :  { %v389_v6 = vadd.f32 0.5, %v385_v62  ;;  %v386_v8 = vmul.f32 0.5, %v1653_v60  ;;  %v1655_v9 = vpop.eup %1654  ;;  %v2923_v60 = vld [vmem:[#allocation13_spill] sm:$0xff]  ;;  %v2929_v62 = vld [vmem:[#allocation19_spill] sm:$0xff] }
 0x19a   :  { %v1657_v54 = vpop.eup %1656 }
 0x19b   :  { %v390_v59 = vadd.f32 0.5, %v386_v8  ;;  %v394_v56 = vmul.f32 %v1655_v9, %v389_v6  ;;  %v388_v61 = vmul.f32 0.5, %v1657_v54  ;;  %v2930_v6 = vld [vmem:[#allocation20_spill] sm:$0xff]  ;;  %v2931_v8 = vld [vmem:[#allocation21_spill] sm:$0xff]  ;;  %v2933_v9 = vld [vmem:[#allocation23_spill] sm:$0xff] }
 0x19c   :  { %v2936_v54 = vld [vmem:[#allocation26_spill] sm:$0xff] }
 0x19d   :  { %v393_v57 = vmul.f32 %v390_v59, %v2132_v58  ;;  %v392_v11 = vadd.f32 0.5, %v388_v61  ;;  %v2922_v58 = vld [vmem:[#allocation12_spill] sm:$0xff]  ;;  %v2932_v59 = vld [vmem:[#allocation22_spill] sm:$0xff]  ;;  %v2937_v61 = vld [vmem:[#allocation27_spill] sm:$0xff] }
 0x19f   :  { %v2222_v55 = vadd.f32 %v394_v56, %v393_v57  ;;  %v2934_v57 = vld [vmem:[#allocation24_spill] sm:$0xff]  ;;  %v2935_v56 = vld [vmem:[#allocation25_spill] sm:$0xff] }
 0x1a1   :  { %1658 = vtanh.f32 %v2222_v55 }
 0x1ae   :  { %v1659_v10 = vpop.eup %1658 }
 0x1af   :  { %v397_v4 = vmul.f32 %v1659_v10, %v392_v11  ;;  %v2938_v11 = vld [vmem:[#allocation28_spill] sm:$0xff]  ;;  %v2939_v10 = vld [vmem:[#allocation29_spill] sm:$0xff] }
 0x1b1   :  { %476 = vmatmul.mubr.f32.vlgmr.msra.gmra.mxu0 %v397_v4  ;;  %547 = vmatmul.mubr.f32.vlgmr.msra.gmra.mxu1 %v397_v4  ;;  %v2940_v4 = vld [vmem:[#allocation30_spill] sm:$0xff] }
 0x1b2   :  { %592 = vmatpush1.msra.mxu0 %v1912_v13  ;;  %663 = vmatpush1.msra.mxu1 %v1914_v14 }
 0x1b3   :  { %593 = vmatprep.subr.mxu0 %v1917_v15  ;;  %664 = vmatprep.subr.mxu1 %v1919_v16 }
 0x1b4   :  { %594 = vmatpush1.msra.mxu0 %v1926_v18  ;;  %665 = vmatpush1.msra.mxu1 %v1928_v19 }
 0x1b5   :  { %595 = vmatprep.subr.mxu0 %v1932_v20  ;;  %666 = vmatprep.subr.mxu1 %v1934_v21 }
 0x1b6   :  { %596 = vmatpush1.msra.mxu0 %v1938_v22  ;;  %667 = vmatpush1.msra.mxu1 %v1940_v23 }
 0x1b7   :  { %597 = vmatprep.subr.mxu0 %v1943_v24  ;;  %668 = vmatprep.subr.mxu1 %v1945_v25 }
 0x1b8   :  { %598 = vmatpush1.msra.mxu0 %v1949_v26  ;;  %669 = vmatpush1.msra.mxu1 %v1951_v27 }
 0x1b9   :  { %599 = vmatprep.subr.mxu0 %v1955_v28  ;;  %670 = vmatprep.subr.mxu1 %v1957_v29 }
 0x1ba   :  { %600 = vmatpush1.msra.mxu0 %v1961_v30  ;;  %671 = vmatpush1.msra.mxu1 %v1963_v31 }
 0x1bb   :  { %601 = vmatprep.subr.mxu0 %v1967_v32  ;;  %672 = vmatprep.subr.mxu1 %v1969_v33 }
 0x1bc   :  { %602 = vmatpush1.msra.mxu0 %v1973_v34  ;;  %673 = vmatpush1.msra.mxu1 %v1975_v35 }
 0x1bd   :  { %603 = vmatprep.subr.mxu0 %v1979_v36  ;;  %674 = vmatprep.subr.mxu1 %v1981_v37 }
 0x1be   :  { %604 = vmatpush1.msra.mxu0 %v1985_v38  ;;  %675 = vmatpush1.msra.mxu1 %v1987_v39 }
 0x1bf   :  { %605 = vmatprep.subr.mxu0 %v1991_v40  ;;  %676 = vmatprep.subr.mxu1 %v1993_v41 }
 0x1c0   :  { %606 = vmatpush1.msra.mxu0 %v1997_v42  ;;  %677 = vmatpush1.msra.mxu1 %v1999_v43 }
 0x1c1   :  { %607 = vmatprep.subr.mxu0 %v2003_v44  ;;  %678 = vmatprep.subr.mxu1 %v2005_v45 }
 0x1c2   :  { %608 = vmatpush1.msra.mxu0 %v2007_v46  ;;  %679 = vmatpush1.msra.mxu1 %v2011_v47 }
 0x1c3   :  { %609 = vmatprep.subr.mxu0 %v2013_v48  ;;  %680 = vmatprep.subr.mxu1 %v2015_v49 }
 0x1c4   :  { %610 = vmatpush1.msra.mxu0 %v2019_v50  ;;  %681 = vmatpush1.msra.mxu1 %v2021_v51 }
 0x1c5   :  { %611 = vmatprep.subr.mxu0 %v2025_v52  ;;  %682 = vmatprep.subr.mxu1 %v2027_v53 }
 0x1c6   :  { %612 = vmatpush1.msra.mxu0 %v2922_v58  ;;  %683 = vmatpush1.msra.mxu1 %v2923_v60 }
 0x1c7   :  { %613 = vmatprep.subr.mxu0 %v2924_v63  ;;  %684 = vmatprep.subr.mxu1 %v2925_v17 }
 0x1c8   :  { %614 = vmatpush1.msra.mxu0 %v2926_v0  ;;  %685 = vmatpush1.msra.mxu1 %v2927_v3 }
 0x1c9   :  { %615 = vmatprep.subr.mxu0 %v2928_v7  ;;  %686 = vmatprep.subr.mxu1 %v2929_v62 }
 0x1ca   :  { %616 = vmatpush1.msra.mxu0 %v2930_v6  ;;  %687 = vmatpush1.msra.mxu1 %v2931_v8  ;;  %v2941_v6 = vld [vmem:[#allocation31_spill] sm:$0xff]  ;;  %v2942_v8 = vld [vmem:[#allocation32_spill] sm:$0xff] }
 0x1cb   :  { %617 = vmatprep.subr.mxu0 %v2932_v59  ;;  %688 = vmatprep.subr.mxu1 %v2933_v9  ;;  %v2943_v59 = vmov 0.0   ;;  %v2944_v9 = vld [vmem:[#allocation33_spill] sm:$0xff] }
 0x1cc   :  { %618 = vmatpush1.msra.mxu0 %v2934_v57  ;;  %689 = vmatpush1.msra.mxu1 %v2935_v56  ;;  %v2945_v56 = vld [vmem:[#allocation10_spill] sm:$0xff] }
 0x1cd   :  { %619 = vmatprep.subr.mxu0 %v2936_v54  ;;  %690 = vmatprep.subr.mxu1 %v2937_v61  ;;  %v2946_v54 = vld [vmem:[#allocation11_spill] sm:$0xff]  ;;  %v401_v61 = vpop.permute.xlu1 %400 }
 0x1ce   :  { %620 = vmatpush1.msra.mxu0 %v2938_v11  ;;  %691 = vmatpush1.msra.mxu1 %v2939_v10  ;;  %v2947_v11 = vld [vmem:[#allocation34_spill] sm:$0xff]  ;;  %v2948_v10 = vld [vmem:[#allocation8_spill] sm:$0xff] }
 0x1cf   :  { %621 = vmatprep.subr.mxu0 %v2940_v4  ;;  %692 = vmatprep.subr.mxu1 %v2941_v6  ;;  %v403_v57 = vmul.f32 %v401_v61, %v2947_v11  ;;  %v404_v62 = vmul.f32 %v401_v61, %v2948_v10  ;;  %v2949_v6 = vld [vmem:[#allocation35_spill] sm:$0xff]  ;;  %v406_v11 = vmul.f32 %v401_v61, %v2119_v12 }
 0x1d0   :  { %622 = vmatpush1.msra.mxu0 %v2942_v8  ;;  %655 = vmatprep.mubr.f32.mxu0 %v2943_v59  ;;  %v405_v7 = vmul.f32 %v401_v61, %v2949_v6  ;;  %v2950_v8 = vld [vmem:[#allocation9_spill] sm:$0xff]  ;;  %v2954_v61 = vld [vmem:[#allocation15_spill] sm:$0xff] }
 0x1d1   :  { %693 = vmatpush1.msra.mxu1 %v2944_v9  ;;  %726 = vmatprep.mubr.f32.mxu1 %v2943_v59  ;;  %v407_v4 = vadd.f32 %v403_v57, %v2115_v1  ;;  %v408_v3 = vadd.f32 %v404_v62, %v2950_v8  ;;  %v410_v57 = vadd.f32 %v406_v11, %v2128_v2  ;;  %v2955_v11 = vld [vmem:[#allocation16_spill] sm:$0xff] }
 0x1d2   :  { %771 = vmatprep.subr.mxu0 %v2945_v56  ;;  %842 = vmatprep.subr.mxu1 %v2946_v54  ;;  %v409_v59 = vadd.f32 %v405_v7, %v2123_v5 }
 0x271   :  { %v477_v0 = vpop.f32.mrf.mxu0  ;;  %v548_v60 = vpop.f32.mrf.mxu1 }
 0x272   :  { %v553_v17 = vadd.f32 %v477_v0, %v407_v4  ;;  %v555_v58 = vadd.f32 %v548_v60, %v409_v59 }
 0x273   :  { %v479_v9 = vpop.f32.mrf.mxu0  ;;  %v550_v1 = vpop.f32.mrf.mxu1 }
 0x274   :  { %v557_v63 = vmul.f32 0.5, %v553_v17  ;;  %v554_v56 = vadd.f32 %v479_v9, %v408_v3  ;;  %v556_v6 = vadd.f32 %v550_v1, %v410_v57  ;;  %v2957_v57 = vld [vmem:[#allocation18_spill] sm:$0xff] }
 0x276   :  { %1660 = vtanh.f32 %v557_v63  ;;  %v558_v54 = vmul.f32 0.5, %v554_v56  ;;  %v560_v62 = vmul.f32 0.5, %v556_v6 }
 0x278   :  { %1662 = vtanh.f32 %v558_v54  ;;  %v2953_v54 = vld [vmem:[#allocation14_spill] sm:$0xff] }
 0x279   :  { %1664 = vtanh.f32 %v555_v58 }
 0x27a   :  { %1666 = vtanh.f32 %v560_v62  ;;  %v2958_v62 = vld [vmem:[#allocation19_spill] sm:$0xff] }
 0x283   :  { %v1661_v8 = vpop.eup %1660 }
 0x284   :  { %v565_v0 = vmul.f32 0.5, %v1661_v8  ;;  %v2952_v8 = vld [vmem:[#allocation13_spill] sm:$0xff] }
 0x285   :  { %v1663_v4 = vpop.eup %1662 }
 0x286   :  { %v569_v17 = vadd.f32 0.5, %v565_v0  ;;  %v566_v10 = vmul.f32 0.5, %v1663_v4  ;;  %v1665_v7 = vpop.eup %1664  ;;  %v2959_v0 = vld [vmem:[#allocation20_spill] sm:$0xff]  ;;  %v2960_v4 = vld [vmem:[#allocation21_spill] sm:$0xff] }
 0x287   :  { %v1667_v60 = vpop.eup %1666 }
 0x288   :  { %v570_v3 = vadd.f32 0.5, %v566_v10  ;;  %v574_v9 = vmul.f32 %v1665_v7, %v569_v17  ;;  %v568_v59 = vmul.f32 0.5, %v1667_v60  ;;  %v2956_v10 = vld [vmem:[#allocation17_spill] sm:$0xff]  ;;  %v2961_v17 = vld [vmem:[#allocation22_spill] sm:$0xff]  ;;  %v2963_v7 = vld [vmem:[#allocation24_spill] sm:$0xff] }
 0x289   :  { %v2966_v60 = vld [vmem:[#allocation27_spill] sm:$0xff] }
 0x28a   :  { %v573_v63 = vmul.f32 %v570_v3, %v2222_v55  ;;  %v572_v58 = vadd.f32 0.5, %v568_v59  ;;  %v2951_v55 = vld [vmem:[#allocation12_spill] sm:$0xff]  ;;  %v2962_v3 = vld [vmem:[#allocation23_spill] sm:$0xff] }
 0x28b   :  { %v2967_v59 = vld [vmem:[#allocation28_spill] sm:$0xff] }
 0x28c   :  { %v2300_v56 = vadd.f32 %v574_v9, %v573_v63  ;;  %v2964_v63 = vld [vmem:[#allocation25_spill] sm:$0xff]  ;;  %v2965_v9 = vld [vmem:[#allocation26_spill] sm:$0xff] }
 0x28e   :  { %1668 = vtanh.f32 %v2300_v56 }
 0x29b   :  { %v1669_v1 = vpop.eup %1668 }
 0x29c   :  { %v577_v6 = vmul.f32 %v1669_v1, %v572_v58  ;;  %v2968_v58 = vld [vmem:[#allocation29_spill] sm:$0xff]  ;;  %v2969_v1 = vld [vmem:[#allocation30_spill] sm:$0xff] }
 0x29e   :  { %656 = vmatmul.mubr.f32.vlgmr.msra.gmra.mxu0 %v577_v6  ;;  %727 = vmatmul.mubr.f32.vlgmr.msra.gmra.mxu1 %v577_v6  ;;  %v2970_v6 = vld [vmem:[#allocation31_spill] sm:$0xff] }
 0x29f   :  { %772 = vmatpush1.msra.mxu0 %v1912_v13  ;;  %843 = vmatpush1.msra.mxu1 %v1914_v14 }
 0x2a0   :  { %773 = vmatprep.subr.mxu0 %v1917_v15  ;;  %844 = vmatprep.subr.mxu1 %v1919_v16 }
 0x2a1   :  { %774 = vmatpush1.msra.mxu0 %v1926_v18  ;;  %845 = vmatpush1.msra.mxu1 %v1928_v19 }
 0x2a2   :  { %775 = vmatprep.subr.mxu0 %v1932_v20  ;;  %846 = vmatprep.subr.mxu1 %v1934_v21 }
 0x2a3   :  { %776 = vmatpush1.msra.mxu0 %v1938_v22  ;;  %847 = vmatpush1.msra.mxu1 %v1940_v23 }
 0x2a4   :  { %777 = vmatprep.subr.mxu0 %v1943_v24  ;;  %848 = vmatprep.subr.mxu1 %v1945_v25 }
 0x2a5   :  { %778 = vmatpush1.msra.mxu0 %v1949_v26  ;;  %849 = vmatpush1.msra.mxu1 %v1951_v27 }
 0x2a6   :  { %779 = vmatprep.subr.mxu0 %v1955_v28  ;;  %850 = vmatprep.subr.mxu1 %v1957_v29 }
 0x2a7   :  { %780 = vmatpush1.msra.mxu0 %v1961_v30  ;;  %851 = vmatpush1.msra.mxu1 %v1963_v31 }
 0x2a8   :  { %781 = vmatprep.subr.mxu0 %v1967_v32  ;;  %852 = vmatprep.subr.mxu1 %v1969_v33 }
 0x2a9   :  { %782 = vmatpush1.msra.mxu0 %v1973_v34  ;;  %853 = vmatpush1.msra.mxu1 %v1975_v35 }
 0x2aa   :  { %783 = vmatprep.subr.mxu0 %v1979_v36  ;;  %854 = vmatprep.subr.mxu1 %v1981_v37 }
 0x2ab   :  { %784 = vmatpush1.msra.mxu0 %v1985_v38  ;;  %855 = vmatpush1.msra.mxu1 %v1987_v39 }
 0x2ac   :  { %785 = vmatprep.subr.mxu0 %v1991_v40  ;;  %856 = vmatprep.subr.mxu1 %v1993_v41 }
 0x2ad   :  { %786 = vmatpush1.msra.mxu0 %v1997_v42  ;;  %857 = vmatpush1.msra.mxu1 %v1999_v43 }
 0x2ae   :  { %787 = vmatprep.subr.mxu0 %v2003_v44  ;;  %858 = vmatprep.subr.mxu1 %v2005_v45 }
 0x2af   :  { %788 = vmatpush1.msra.mxu0 %v2007_v46  ;;  %859 = vmatpush1.msra.mxu1 %v2011_v47 }
 0x2b0   :  { %789 = vmatprep.subr.mxu0 %v2013_v48  ;;  %860 = vmatprep.subr.mxu1 %v2015_v49 }
 0x2b1   :  { %790 = vmatpush1.msra.mxu0 %v2019_v50  ;;  %861 = vmatpush1.msra.mxu1 %v2021_v51 }
 0x2b2   :  { %791 = vmatprep.subr.mxu0 %v2025_v52  ;;  %862 = vmatprep.subr.mxu1 %v2027_v53 }
 0x2b3   :  { %792 = vmatpush1.msra.mxu0 %v2951_v55  ;;  %863 = vmatpush1.msra.mxu1 %v2952_v8 }
 0x2b4   :  { %793 = vmatprep.subr.mxu0 %v2953_v54  ;;  %864 = vmatprep.subr.mxu1 %v2954_v61 }
 0x2b5   :  { %794 = vmatpush1.msra.mxu0 %v2955_v11  ;;  %865 = vmatpush1.msra.mxu1 %v2956_v10  ;;  %v2980_v11 = vld [vmem:[#allocation9_spill] sm:$0xff] }
 0x2b6   :  { %795 = vmatprep.subr.mxu0 %v2957_v57  ;;  %866 = vmatprep.subr.mxu1 %v2958_v62 }
 0x2b7   :  { %796 = vmatpush1.msra.mxu0 %v2959_v0  ;;  %867 = vmatpush1.msra.mxu1 %v2960_v4  ;;  %v2971_v4 = vld [vmem:[#allocation32_spill] sm:$0xff] }
 0x2b8   :  { %797 = vmatprep.subr.mxu0 %v2961_v17  ;;  %868 = vmatprep.subr.mxu1 %v2962_v3  ;;  %v2972_v17 = vmov 0.0   ;;  %v2973_v3 = vld [vmem:[#allocation33_spill] sm:$0xff] }
 0x2b9   :  { %798 = vmatpush1.msra.mxu0 %v2963_v7  ;;  %869 = vmatpush1.msra.mxu1 %v2964_v63  ;;  %v2974_v63 = vld [vmem:[#allocation10_spill] sm:$0xff] }
 0x2ba   :  { %799 = vmatprep.subr.mxu0 %v2965_v9  ;;  %870 = vmatprep.subr.mxu1 %v2966_v60  ;;  %v2975_v9 = vld [vmem:[#allocation11_spill] sm:$0xff]  ;;  %v581_v60 = vpop.permute.xlu1 %580 }
 0x2bb   :  { %800 = vmatpush1.msra.mxu0 %v2967_v59  ;;  %871 = vmatpush1.msra.mxu1 %v2968_v58  ;;  %v2976_v59 = vld [vmem:[#allocation34_spill] sm:$0xff]  ;;  %v2977_v58 = vld [vmem:[#allocation8_spill] sm:$0xff] }
 0x2bc   :  { %801 = vmatprep.subr.mxu0 %v2969_v1  ;;  %872 = vmatprep.subr.mxu1 %v2970_v6  ;;  %v583_v7 = vmul.f32 %v581_v60, %v2976_v59  ;;  %v584_v0 = vmul.f32 %v581_v60, %v2977_v58  ;;  %v2978_v1 = vld [vmem:[#allocation36_spill] sm:$0xff]  ;;  %v586_v58 = vmul.f32 %v581_v60, %v2119_v12 }
 0x2bd   :  { %802 = vmatpush1.msra.mxu0 %v2971_v4  ;;  %835 = vmatprep.mubr.f32.mxu0 %v2972_v17  ;;  %v2979_v4 = vld [vmem:[#allocation35_spill] sm:$0xff] }
 0x2be   :  { %873 = vmatpush1.msra.mxu1 %v2973_v3  ;;  %906 = vmatprep.mubr.f32.mxu1 %v2972_v17  ;;  %v587_v62 = vadd.f32 %v583_v7, %v2978_v1  ;;  %v585_v10 = vmul.f32 %v581_v60, %v2979_v4  ;;  %v588_v61 = vadd.f32 %v584_v0, %v2980_v11 }
 0x2bf   :  { %951 = vmatprep.subr.mxu0 %v2974_v63  ;;  %1022 = vmatprep.subr.mxu1 %v2975_v9 }
 0x2c0   :  { %v589_v63 = vadd.f32 %v585_v10, %v2123_v5 }
 0x35e   :  { %v657_v6 = vpop.f32.mrf.mxu0  ;;  %v728_v8 = vpop.f32.mrf.mxu1 }
 0x35f   :  { %v733_v57 = vadd.f32 %v657_v6, %v587_v62  ;;  %v735_v55 = vadd.f32 %v728_v8, %v589_v63  ;;  %v590_v62 = vadd.f32 %v586_v58, %v2128_v2 }
 0x360   :  { %v659_v3 = vpop.f32.mrf.mxu0  ;;  %v730_v59 = vpop.f32.mrf.mxu1 }
 0x361   :  { %v737_v54 = vmul.f32 0.5, %v733_v57  ;;  %v734_v17 = vadd.f32 %v659_v3, %v588_v61  ;;  %v736_v7 = vadd.f32 %v730_v59, %v590_v62 }
 0x363   :  { %1670 = vtanh.f32 %v737_v54  ;;  %v738_v9 = vmul.f32 0.5, %v734_v17  ;;  %v740_v6 = vmul.f32 0.5, %v736_v7 }
 0x365   :  { %1672 = vtanh.f32 %v738_v9 }
 0x366   :  { %1674 = vtanh.f32 %v735_v55 }
 0x367   :  { %1676 = vtanh.f32 %v740_v6 }
 0x370   :  { %v1671_v4 = vpop.eup %1670 }
 0x371   :  { %v745_v0 = vmul.f32 0.5, %v1671_v4 }
 0x372   :  { %v1673_v11 = vpop.eup %1672 }
 0x373   :  { %v749_v57 = vadd.f32 0.5, %v745_v0  ;;  %v746_v61 = vmul.f32 0.5, %v1673_v11  ;;  %v1675_v3 = vpop.eup %1674 }
 0x374   :  { %v1677_v55 = vpop.eup %1676 }
 0x375   :  { %v750_v54 = vadd.f32 0.5, %v746_v61  ;;  %v754_v8 = vmul.f32 %v1675_v3, %v749_v57  ;;  %v748_v60 = vmul.f32 0.5, %v1677_v55 }
 0x377   :  { %v753_v10 = vmul.f32 %v750_v54, %v2300_v56  ;;  %v752_v58 = vadd.f32 0.5, %v748_v60 }
 0x379   :  { %v2378_v17 = vadd.f32 %v754_v8, %v753_v10 }
 0x37b   :  { %1678 = vtanh.f32 %v2378_v17 }
 0x388   :  { %v1679_v59 = vpop.eup %1678 }
 0x389   :  { %v757_v63 = vmul.f32 %v1679_v59, %v752_v58 }
 0x38b   :  { %836 = vmatmul.mubr.f32.vlgmr.msra.gmra.mxu0 %v757_v63  ;;  %907 = vmatmul.mubr.f32.vlgmr.msra.gmra.mxu1 %v757_v63 }
 0x38c   :  { %952 = vmatpush1.msra.mxu0 %v1912_v13  ;;  %1023 = vmatpush1.msra.mxu1 %v1914_v14  ;;  %v2981_v13 = vld [vmem:[#allocation12_spill] sm:$0xff]  ;;  %v2982_v14 = vld [vmem:[#allocation13_spill] sm:$0xff] }
 0x38d   :  { %953 = vmatprep.subr.mxu0 %v1917_v15  ;;  %1024 = vmatprep.subr.mxu1 %v1919_v16  ;;  %v2983_v15 = vld [vmem:[#allocation14_spill] sm:$0xff]  ;;  %v2984_v16 = vld [vmem:[#allocation15_spill] sm:$0xff] }
 0x38e   :  { %954 = vmatpush1.msra.mxu0 %v1926_v18  ;;  %1025 = vmatpush1.msra.mxu1 %v1928_v19  ;;  %v2985_v18 = vld [vmem:[#allocation16_spill] sm:$0xff]  ;;  %v2986_v19 = vld [vmem:[#allocation17_spill] sm:$0xff] }
 0x38f   :  { %955 = vmatprep.subr.mxu0 %v1932_v20  ;;  %1026 = vmatprep.subr.mxu1 %v1934_v21  ;;  %v2987_v20 = vld [vmem:[#allocation18_spill] sm:$0xff]  ;;  %v2988_v21 = vld [vmem:[#allocation19_spill] sm:$0xff] }
 0x390   :  { %956 = vmatpush1.msra.mxu0 %v1938_v22  ;;  %1027 = vmatpush1.msra.mxu1 %v1940_v23  ;;  %v2989_v22 = vld [vmem:[#allocation20_spill] sm:$0xff]  ;;  %v2990_v23 = vld [vmem:[#allocation21_spill] sm:$0xff] }
 0x391   :  { %957 = vmatprep.subr.mxu0 %v1943_v24  ;;  %1028 = vmatprep.subr.mxu1 %v1945_v25  ;;  %v2991_v24 = vld [vmem:[#allocation22_spill] sm:$0xff]  ;;  %v2992_v25 = vld [vmem:[#allocation23_spill] sm:$0xff] }
 0x392   :  { %958 = vmatpush1.msra.mxu0 %v1949_v26  ;;  %1029 = vmatpush1.msra.mxu1 %v1951_v27  ;;  %v2993_v26 = vld [vmem:[#allocation24_spill] sm:$0xff]  ;;  %v2994_v27 = vld [vmem:[#allocation25_spill] sm:$0xff] }
 0x393   :  { %959 = vmatprep.subr.mxu0 %v1955_v28  ;;  %1030 = vmatprep.subr.mxu1 %v1957_v29  ;;  %v2995_v28 = vld [vmem:[#allocation26_spill] sm:$0xff]  ;;  %v2996_v29 = vld [vmem:[#allocation27_spill] sm:$0xff] }
 0x394   :  { %960 = vmatpush1.msra.mxu0 %v1961_v30  ;;  %1031 = vmatpush1.msra.mxu1 %v1963_v31  ;;  %v2997_v30 = vld [vmem:[#allocation28_spill] sm:$0xff]  ;;  %v2998_v31 = vld [vmem:[#allocation29_spill] sm:$0xff] }
 0x395   :  { %961 = vmatprep.subr.mxu0 %v1967_v32  ;;  %1032 = vmatprep.subr.mxu1 %v1969_v33  ;;  %v2999_v32 = vld [vmem:[#allocation30_spill] sm:$0xff]  ;;  %v3000_v33 = vld [vmem:[#allocation31_spill] sm:$0xff] }
 0x396   :  { %962 = vmatpush1.msra.mxu0 %v1973_v34  ;;  %1033 = vmatpush1.msra.mxu1 %v1975_v35  ;;  %v3001_v34 = vld [vmem:[#allocation32_spill] sm:$0xff]  ;;  %v3002_v35 = vmov 0.0  }
 0x397   :  { %963 = vmatprep.subr.mxu0 %v1979_v36  ;;  %1034 = vmatprep.subr.mxu1 %v1981_v37  ;;  %v3003_v36 = vld [vmem:[#allocation33_spill] sm:$0xff] }
 0x398   :  { %964 = vmatpush1.msra.mxu0 %v1985_v38  ;;  %1035 = vmatpush1.msra.mxu1 %v1987_v39  ;;  %v2445_v37 = vld [vmem:[#allocation2 + $0x1e8] sm:$0xff]  ;;  %v2448_v38 = vld [vmem:[#allocation2 + $0x1f8] sm:$0xff]  ;;  %v761_v39 = vpop.permute.xlu0 %760 }
 0x399   :  { %965 = vmatprep.subr.mxu0 %v1991_v40  ;;  %1036 = vmatprep.subr.mxu1 %v1993_v41  ;;  %v3004_v40 = vld [vmem:[#allocation34_spill] sm:$0xff]  ;;  %v766_v62 = vmul.f32 %v761_v39, %v2119_v12 }
 0x39a   :  { %966 = vmatpush1.msra.mxu0 %v1997_v42  ;;  %1037 = vmatpush1.msra.mxu1 %v1999_v43  ;;  %v763_v41 = vmul.f32 %v761_v39, %v3004_v40  ;;  %v3005_v42 = vld [vmem:[#allocation8_spill] sm:$0xff] }
 0x39b   :  { %967 = vmatprep.subr.mxu0 %v2003_v44  ;;  %1038 = vmatprep.subr.mxu1 %v2005_v45  ;;  %v764_v43 = vmul.f32 %v761_v39, %v3005_v42  ;;  %v770_v6 = vadd.f32 %v766_v62, %v2128_v2  ;;  %v2562_v62 = vld [vmem:[#allocation2 + $0xf0] sm:$0xff] }
 0x39c   :  { %968 = vmatpush1.msra.mxu0 %v2007_v46  ;;  %1039 = vmatpush1.msra.mxu1 %v2011_v47  ;;  %v767_v44 = vadd.f32 %v763_v41, %v2978_v1  ;;  %v3006_v47 = vld [vmem:[#allocation35_spill] sm:$0xff] }
 0x39d   :  { %969 = vmatprep.subr.mxu0 %v2013_v48  ;;  %1040 = vmatprep.subr.mxu1 %v2015_v49  ;;  %v765_v48 = vmul.f32 %v761_v39, %v3006_v47  ;;  %v3007_v49 = vld [vmem:[#allocation9_spill] sm:$0xff]  ;;  %v2520_v41 = vld [vmem:[#allocation2 + $0x158] sm:$0xff] }
 0x39e   :  { %970 = vmatpush1.msra.mxu0 %v2019_v50  ;;  %1041 = vmatpush1.msra.mxu1 %v2021_v51  ;;  %v768_v50 = vadd.f32 %v764_v43, %v3007_v49  ;;  %v2517_v39 = vld [vmem:[#allocation2 + $0x148] sm:$0xff]  ;;  %v2523_v43 = vld [vmem:[#allocation2 + $0x140] sm:$0xff] }
 0x39f   :  { %971 = vmatprep.subr.mxu0 %v2025_v52  ;;  %1042 = vmatprep.subr.mxu1 %v2027_v53  ;;  %v769_v11 = vadd.f32 %v765_v48, %v2123_v5  ;;  %v2535_v48 = vld [vmem:[#allocation2 + $0x120] sm:$0xff] }
 0x3a0   :  { %972 = vmatpush1.msra.mxu0 %v2981_v13  ;;  %1043 = vmatpush1.msra.mxu1 %v2982_v14 }
 0x3a1   :  { %973 = vmatprep.subr.mxu0 %v2983_v15  ;;  %1044 = vmatprep.subr.mxu1 %v2984_v16 }
 0x3a2   :  { %974 = vmatpush1.msra.mxu0 %v2985_v18  ;;  %1045 = vmatpush1.msra.mxu1 %v2986_v19  ;;  %v2463_v19 = vld [vmem:[#allocation2 + $0x1e0] sm:$0xff] }
 0x3a3   :  { %975 = vmatprep.subr.mxu0 %v2987_v20  ;;  %1046 = vmatprep.subr.mxu1 %v2988_v21  ;;  %v2466_v20 = vld [vmem:[#allocation2 + $0x1f0] sm:$0xff]  ;;  %v2472_v21 = vld [vmem:[#allocation2 + $0x1d8] sm:$0xff] }
 0x3a4   :  { %976 = vmatpush1.msra.mxu0 %v2989_v22  ;;  %1047 = vmatpush1.msra.mxu1 %v2990_v23  ;;  %v2475_v22 = vld [vmem:[#allocation2 + $0x1c0] sm:$0xff]  ;;  %v2478_v23 = vld [vmem:[#allocation2 + $0x1d0] sm:$0xff] }
 0x3a5   :  { %977 = vmatprep.subr.mxu0 %v2991_v24  ;;  %1048 = vmatprep.subr.mxu1 %v2992_v25  ;;  %v2481_v24 = vld [vmem:[#allocation2 + $0x1a8] sm:$0xff]  ;;  %v2484_v25 = vld [vmem:[#allocation2 + $0x1b8] sm:$0xff] }
 0x3a6   :  { %978 = vmatpush1.msra.mxu0 %v2993_v26  ;;  %1049 = vmatpush1.msra.mxu1 %v2994_v27  ;;  %v2487_v26 = vld [vmem:[#allocation2 + $0x1a0] sm:$0xff]  ;;  %v2490_v27 = vld [vmem:[#allocation2 + $0x1b0] sm:$0xff] }
 0x3a7   :  { %979 = vmatprep.subr.mxu0 %v2995_v28  ;;  %1050 = vmatprep.subr.mxu1 %v2996_v29  ;;  %v2493_v28 = vld [vmem:[#allocation2 + $0x188] sm:$0xff]  ;;  %v2496_v29 = vld [vmem:[#allocation2 + $0x198] sm:$0xff] }
 0x3a8   :  { %980 = vmatpush1.msra.mxu0 %v2997_v30  ;;  %1051 = vmatpush1.msra.mxu1 %v2998_v31  ;;  %v2499_v30 = vld [vmem:[#allocation2 + $0x180] sm:$0xff]  ;;  %v2502_v31 = vld [vmem:[#allocation2 + $0x190] sm:$0xff] }
 0x3a9   :  { %981 = vmatprep.subr.mxu0 %v2999_v32  ;;  %1052 = vmatprep.subr.mxu1 %v3000_v33  ;;  %v2505_v32 = vld [vmem:[#allocation2 + $0x168] sm:$0xff]  ;;  %v2508_v33 = vld [vmem:[#allocation2 + $0x178] sm:$0xff] }
 0x3aa   :  { %982 = vmatpush1.msra.mxu0 %v3001_v34  ;;  %1015 = vmatprep.mubr.f32.mxu0 %v3002_v35  ;;  %v2511_v34 = vld [vmem:[#allocation2 + $0x160] sm:$0xff] }
 0x3ab   :  { %1053 = vmatpush1.msra.mxu1 %v3003_v36  ;;  %1086 = vmatprep.mubr.f32.mxu1 %v3002_v35  ;;  %v2514_v36 = vld [vmem:[#allocation2 + $0x170] sm:$0xff] }
 0x3ac   :  { %1131 = vmatprep.subr.mxu0 %v2445_v37  ;;  %1202 = vmatprep.subr.mxu1 %v2448_v38 }
 0x44b   :  { %v837_v45 = vpop.f32.mrf.mxu0  ;;  %v908_v56 = vpop.f32.mrf.mxu1 }
 0x44c   :  { %v913_v46 = vadd.f32 %v837_v45, %v767_v44  ;;  %v915_v9 = vadd.f32 %v908_v56, %v769_v11  ;;  %v2526_v44 = vld [vmem:[#allocation2 + $0x150] sm:$0xff]  ;;  %v2529_v45 = vld [vmem:[#allocation2 + $0x128] sm:$0xff] }
 0x44d   :  { %v839_v51 = vpop.f32.mrf.mxu0  ;;  %v910_v7 = vpop.f32.mrf.mxu1  ;;  %v2550_v56 = vld [vmem:[#allocation2 + $0x110] sm:$0xff]  ;;  %v2553_v11 = vld [vmem:[#allocation2 + $0xe8] sm:$0xff] }
 0x44e   :  { %v917_v52 = vmul.f32 0.5, %v913_v46  ;;  %v914_v53 = vadd.f32 %v839_v51, %v768_v50  ;;  %v916_v0 = vadd.f32 %v910_v7, %v770_v6  ;;  %v2532_v46 = vld [vmem:[#allocation2 + $0x138] sm:$0xff]  ;;  %v2538_v50 = vld [vmem:[#allocation2 + $0x130] sm:$0xff]  ;;  %v2541_v51 = vld [vmem:[#allocation2 + $0x108] sm:$0xff] }
 0x44f   :  { %v2565_v7 = vld [vmem:[#allocation2 + $0xc8] sm:$0xff]  ;;  %v2568_v6 = vld [vmem:[#allocation2 + $0xd8] sm:$0xff] }
 0x450   :  { %1680 = vtanh.f32 %v917_v52  ;;  %v918_v4 = vmul.f32 0.5, %v914_v53  ;;  %v920_v57 = vmul.f32 0.5, %v916_v0  ;;  %v2544_v52 = vld [vmem:[#allocation2 + $0x118] sm:$0xff]  ;;  %v2547_v53 = vld [vmem:[#allocation2 + $0x100] sm:$0xff] }
 0x451   :  { %v2571_v0 = vld [vmem:[#allocation2 + $0xc0] sm:$0xff] }
 0x452   :  { %1682 = vtanh.f32 %v918_v4  ;;  %v2556_v4 = vld [vmem:[#allocation2 + $0xf8] sm:$0xff] }
 0x453   :  { %1684 = vtanh.f32 %v915_v9  ;;  %v2559_v9 = vld [vmem:[#allocation2 + $0xe0] sm:$0xff] }
 0x454   :  { %1686 = vtanh.f32 %v920_v57  ;;  %v2574_v57 = vld [vmem:[#allocation2 + $0xd0] sm:$0xff] }
 0x45d   :  { %v1681_v61 = vpop.eup %1680 }
 0x45e   :  { %v925_v54 = vmul.f32 0.5, %v1681_v61  ;;  %v2577_v61 = vld [vmem:[#allocation2 + $0xa8] sm:$0xff] }
 0x45f   :  { %v1683_v3 = vpop.eup %1682 }
 0x460   :  { %v929_v10 = vadd.f32 0.5, %v925_v54  ;;  %v926_v8 = vmul.f32 0.5, %v1683_v3  ;;  %v1685_v60 = vpop.eup %1684  ;;  %v2580_v54 = vld [vmem:[#allocation2 + $0xb8] sm:$0xff]  ;;  %v2583_v3 = vld [vmem:[#allocation2 + $0xa0] sm:$0xff] }
 0x461   :  { %v1687_v13 = vpop.eup %1686  ;;  %3008 = vst [vmem:[#allocation10_spill] sm:$0xff] %v2583_v3 }
 0x462   :  { %v930_v55 = vadd.f32 0.5, %v926_v8  ;;  %v934_v59 = vmul.f32 %v1685_v60, %v929_v10  ;;  %v928_v14 = vmul.f32 0.5, %v1687_v13  ;;  %v2586_v10 = vld [vmem:[#allocation2 + $0xb0] sm:$0xff]  ;;  %v2589_v8 = vld [vmem:[#allocation2 + $0x88] sm:$0xff]  ;;  %v2595_v60 = vld [vmem:[#allocation2 + $0x80] sm:$0xff] }
 0x463   :  { %3009 = vst [vmem:[#allocation11_spill] sm:$0xff] %v2586_v10  ;;  %3010 = vst [vmem:[#allocation36_spill] sm:$0xff] %v2589_v8  ;;  %v2604_v13 = vld [vmem:[#allocation2 + $0x78] sm:$0xff] }
 0x464   :  { %v933_v58 = vmul.f32 %v930_v55, %v2378_v17  ;;  %v932_v15 = vadd.f32 0.5, %v928_v14  ;;  %v2469_v17 = vld [vmem:[#allocation2 + $0x1c8] sm:$0xff]  ;;  %v2592_v55 = vld [vmem:[#allocation2 + $0x98] sm:$0xff]  ;;  %3012 = vst [vmem:[#allocation13_spill] sm:$0xff] %v2595_v60  ;;  %3015 = vst [vmem:[#allocation16_spill] sm:$0xff] %v2604_v13 }
 0x465   :  { %3011 = vst [vmem:[#allocation12_spill] sm:$0xff] %v2592_v55  ;;  %v2607_v14 = vld [vmem:[#allocation2 + $0x60] sm:$0xff] }
 0x466   :  { %v2460_v63 = vadd.f32 %v934_v59, %v933_v58  ;;  %v2598_v58 = vld [vmem:[#allocation2 + $0x90] sm:$0xff]  ;;  %v2601_v59 = vld [vmem:[#allocation2 + $0x68] sm:$0xff]  ;;  %3016 = vst [vmem:[#allocation17_spill] sm:$0xff] %v2607_v14 }
 0x467   :  { %3013 = vst [vmem:[#allocation14_spill] sm:$0xff] %v2598_v58  ;;  %3014 = vst [vmem:[#allocation15_spill] sm:$0xff] %v2601_v59 }
 0x468   :  { %1688 = vtanh.f32 %v2460_v63 }
 0x475   :  { %v1689_v16 = vpop.eup %1688 }
 0x476   :  { %v937_v18 = vmul.f32 %v1689_v16, %v932_v15  ;;  %v2610_v15 = vld [vmem:[#allocation2 + $0x70] sm:$0xff]  ;;  %v2613_v16 = vld [vmem:[#allocation2 + $0x48] sm:$0xff] }
 0x477   :  { %3017 = vst [vmem:[#allocation18_spill] sm:$0xff] %v2610_v15  ;;  %3018 = vst [vmem:[#allocation19_spill] sm:$0xff] %v2613_v16 }
 0x478   :  { %1016 = vmatmul.mubr.f32.vlgmr.msra.gmra.mxu0 %v937_v18  ;;  %1087 = vmatmul.mubr.f32.vlgmr.msra.gmra.mxu1 %v937_v18  ;;  %v2616_v18 = vld [vmem:[#allocation2 + $0x58] sm:$0xff] }
 0x479   :  { %1132 = vmatpush1.msra.mxu0 %v2463_v19  ;;  %1203 = vmatpush1.msra.mxu1 %v2466_v20  ;;  %3019 = vst [vmem:[#allocation20_spill] sm:$0xff] %v2616_v18 }
 0x47a   :  { %1133 = vmatprep.subr.mxu0 %v2469_v17  ;;  %1204 = vmatprep.subr.mxu1 %v2472_v21 }
 0x47b   :  { %1134 = vmatpush1.msra.mxu0 %v2475_v22  ;;  %1205 = vmatpush1.msra.mxu1 %v2478_v23 }
 0x47c   :  { %1135 = vmatprep.subr.mxu0 %v2481_v24  ;;  %1206 = vmatprep.subr.mxu1 %v2484_v25 }
 0x47d   :  { %1136 = vmatpush1.msra.mxu0 %v2487_v26  ;;  %1207 = vmatpush1.msra.mxu1 %v2490_v27 }
 0x47e   :  { %1137 = vmatprep.subr.mxu0 %v2493_v28  ;;  %1208 = vmatprep.subr.mxu1 %v2496_v29 }
 0x47f   :  { %1138 = vmatpush1.msra.mxu0 %v2499_v30  ;;  %1209 = vmatpush1.msra.mxu1 %v2502_v31 }
 0x480   :  { %1139 = vmatprep.subr.mxu0 %v2505_v32  ;;  %1210 = vmatprep.subr.mxu1 %v2508_v33 }
 0x481   :  { %1140 = vmatpush1.msra.mxu0 %v2511_v34  ;;  %1211 = vmatpush1.msra.mxu1 %v2514_v36 }
 0x482   :  { %1141 = vmatprep.subr.mxu0 %v2517_v39  ;;  %1212 = vmatprep.subr.mxu1 %v2520_v41 }
 0x483   :  { %1142 = vmatpush1.msra.mxu0 %v2523_v43  ;;  %1213 = vmatpush1.msra.mxu1 %v2526_v44 }
 0x484   :  { %1143 = vmatprep.subr.mxu0 %v2529_v45  ;;  %1214 = vmatprep.subr.mxu1 %v2532_v46 }
 0x485   :  { %1144 = vmatpush1.msra.mxu0 %v2535_v48  ;;  %1215 = vmatpush1.msra.mxu1 %v2538_v50 }
 0x486   :  { %1145 = vmatprep.subr.mxu0 %v2541_v51  ;;  %1216 = vmatprep.subr.mxu1 %v2544_v52 }
 0x487   :  { %1146 = vmatpush1.msra.mxu0 %v2547_v53  ;;  %1217 = vmatpush1.msra.mxu1 %v2550_v56 }
 0x488   :  { %1147 = vmatprep.subr.mxu0 %v2553_v11  ;;  %1218 = vmatprep.subr.mxu1 %v2556_v4 }
 0x489   :  { %1148 = vmatpush1.msra.mxu0 %v2559_v9  ;;  %1219 = vmatpush1.msra.mxu1 %v2562_v62 }
 0x48a   :  { %1149 = vmatprep.subr.mxu0 %v2565_v7  ;;  %1220 = vmatprep.subr.mxu1 %v2568_v6 }
 0x48b   :  { %1150 = vmatpush1.msra.mxu0 %v2571_v0  ;;  %1221 = vmatpush1.msra.mxu1 %v2574_v57 }
 0x48c   :  { %1151 = vmatprep.subr.mxu0 %v2577_v61  ;;  %1222 = vmatprep.subr.mxu1 %v2580_v54 }
 0x48d   :  { %1152 = vmatpush1.msra.mxu0 %v2583_v3  ;;  %1223 = vmatpush1.msra.mxu1 %v2586_v10 }
 0x48e   :  { %1153 = vmatprep.subr.mxu0 %v2589_v8  ;;  %1224 = vmatprep.subr.mxu1 %v2592_v55 }
 0x48f   :  { %1154 = vmatpush1.msra.mxu0 %v2595_v60  ;;  %1225 = vmatpush1.msra.mxu1 %v2598_v58 }
 0x490   :  { %1155 = vmatprep.subr.mxu0 %v2601_v59  ;;  %1226 = vmatprep.subr.mxu1 %v2604_v13  ;;  %v2619_v59 = vld [vmem:[#allocation2 + $0x40] sm:$0xff]  ;;  %v2622_v13 = vld [vmem:[#allocation2 + $0x50] sm:$0xff] }
 0x491   :  { %1156 = vmatpush1.msra.mxu0 %v2607_v14  ;;  %1227 = vmatpush1.msra.mxu1 %v2610_v15  ;;  %3020 = vst [vmem:[#allocation21_spill] sm:$0xff] %v2619_v59  ;;  %3021 = vst [vmem:[#allocation22_spill] sm:$0xff] %v2622_v13  ;;  %v2625_v14 = vld [vmem:[#allocation2 + $0x28] sm:$0xff]  ;;  %v2628_v15 = vld [vmem:[#allocation2 + $0x38] sm:$0xff] }
 0x492   :  { %1157 = vmatprep.subr.mxu0 %v2613_v16  ;;  %1228 = vmatprep.subr.mxu1 %v2616_v18  ;;  %3022 = vst [vmem:[#allocation23_spill] sm:$0xff] %v2625_v14  ;;  %3023 = vst [vmem:[#allocation24_spill] sm:$0xff] %v2628_v15  ;;  %v2631_v16 = vld [vmem:[#allocation2 + $0x20] sm:$0xff]  ;;  %v2634_v18 = vld [vmem:[#allocation2 + $0x30] sm:$0xff] }
 0x493   :  { %1158 = vmatpush1.msra.mxu0 %v2619_v59  ;;  %1229 = vmatpush1.msra.mxu1 %v2622_v13  ;;  %3024 = vst [vmem:[#allocation25_spill] sm:$0xff] %v2631_v16  ;;  %3025 = vst [vmem:[#allocation26_spill] sm:$0xff] %v2634_v18  ;;  %v2637_v59 = vld [vmem:[#allocation2 + $0x8] sm:$0xff]  ;;  %v2640_v13 = vld [vmem:[#allocation2 + $0x18] sm:$0xff] }
 0x494   :  { %1159 = vmatprep.subr.mxu0 %v2625_v14  ;;  %1230 = vmatprep.subr.mxu1 %v2628_v15  ;;  %3026 = vst [vmem:[#allocation27_spill] sm:$0xff] %v2637_v59  ;;  %3027 = vst [vmem:[#allocation28_spill] sm:$0xff] %v2640_v13  ;;  %v2643_v14 = vld [vmem:[#allocation2] sm:$0xff]  ;;  %v2647_v15 = vld [vmem:[#allocation2 + $0x10] sm:$0xff] }
 0x495   :  { %1160 = vmatpush1.msra.mxu0 %v2631_v16  ;;  %1231 = vmatpush1.msra.mxu1 %v2634_v18  ;;  %3028 = vst [vmem:[#allocation29_spill] sm:$0xff] %v2643_v14  ;;  %3029 = vst [vmem:[#allocation30_spill] sm:$0xff] %v2647_v15 }
 0x496   :  { %1161 = vmatprep.subr.mxu0 %v2637_v59  ;;  %1232 = vmatprep.subr.mxu1 %v2640_v13  ;;  %v941_v59 = vpop.permute.xlu1 %940 }
 0x497   :  { %1162 = vmatpush1.msra.mxu0 %v2643_v14  ;;  %1195 = vmatprep.mubr.f32.mxu0 %v3002_v35  ;;  %v943_v18 = vmul.f32 %v941_v59, %v3004_v40  ;;  %v944_v13 = vmul.f32 %v941_v59, %v3005_v42  ;;  %v945_v60 = vmul.f32 %v941_v59, %v3006_v47 }
 0x498   :  { %1233 = vmatpush1.msra.mxu1 %v2647_v15  ;;  %1266 = vmatprep.mubr.f32.mxu1 %v3002_v35  ;;  %v946_v42 = vmul.f32 %v941_v59, %v2119_v12 }
 0x499   :  { %1311 = vmatprep.subr.mxu0 %v2445_v37  ;;  %1382 = vmatprep.subr.mxu1 %v2448_v38  ;;  %v947_v16 = vadd.f32 %v943_v18, %v2978_v1  ;;  %v948_v55 = vadd.f32 %v944_v13, %v3007_v49  ;;  %v949_v37 = vadd.f32 %v945_v60, %v2123_v5 }
 0x538   :  { %v1017_v14 = vpop.f32.mrf.mxu0  ;;  %v1088_v10 = vpop.f32.mrf.mxu1 }
 0x539   :  { %v1093_v58 = vadd.f32 %v1017_v14, %v947_v16  ;;  %v1095_v3 = vadd.f32 %v1088_v10, %v949_v37  ;;  %v950_v14 = vadd.f32 %v946_v42, %v2128_v2 }
 0x53a   :  { %v1019_v15 = vpop.f32.mrf.mxu0  ;;  %v1090_v40 = vpop.f32.mrf.mxu1 }
 0x53b   :  { %v1097_v8 = vmul.f32 0.5, %v1093_v58  ;;  %v1094_v35 = vadd.f32 %v1019_v15, %v948_v55  ;;  %v1096_v16 = vadd.f32 %v1090_v40, %v950_v14 }
 0x53d   :  { %1690 = vtanh.f32 %v1097_v8  ;;  %v1098_v38 = vmul.f32 0.5, %v1094_v35  ;;  %v1100_v18 = vmul.f32 0.5, %v1096_v16 }
 0x53f   :  { %1692 = vtanh.f32 %v1098_v38 }
 0x540   :  { %1694 = vtanh.f32 %v1095_v3 }
 0x541   :  { %1696 = vtanh.f32 %v1100_v18 }
 0x54a   :  { %v1691_v47 = vpop.eup %1690 }
 0x54b   :  { %v1105_v13 = vmul.f32 0.5, %v1691_v47  ;;  %v3030_v47 = vld [vmem:[#allocation10_spill] sm:$0xff] }
 0x54c   :  { %v1693_v49 = vpop.eup %1692 }
 0x54d   :  { %v1109_v58 = vadd.f32 0.5, %v1105_v13  ;;  %v1106_v55 = vmul.f32 0.5, %v1693_v49  ;;  %v1695_v15 = vpop.eup %1694  ;;  %v3031_v49 = vld [vmem:[#allocation11_spill] sm:$0xff] }
 0x54e   :  { %v1697_v3 = vpop.eup %1696 }
 0x54f   :  { %v1110_v8 = vadd.f32 0.5, %v1106_v55  ;;  %v1114_v10 = vmul.f32 %v1695_v15, %v1109_v58  ;;  %v1108_v59 = vmul.f32 0.5, %v1697_v3 }
 0x551   :  { %v1113_v35 = vmul.f32 %v1110_v8, %v2460_v63  ;;  %v1112_v42 = vadd.f32 0.5, %v1108_v59  ;;  %v3032_v63 = vld [vmem:[#allocation36_spill] sm:$0xff] }
 0x553   :  { %v2662_v60 = vadd.f32 %v1114_v10, %v1113_v35 }
 0x555   :  { %1698 = vtanh.f32 %v2662_v60 }
 0x562   :  { %v1699_v40 = vpop.eup %1698 }
 0x563   :  { %v1117_v37 = vmul.f32 %v1699_v40, %v1112_v42 }
 0x565   :  { %1196 = vmatmul.mubr.f32.vlgmr.msra.gmra.mxu0 %v1117_v37  ;;  %1267 = vmatmul.mubr.f32.vlgmr.msra.gmra.mxu1 %v1117_v37 }
 0x566   :  { %1312 = vmatpush1.msra.mxu0 %v2463_v19  ;;  %1383 = vmatpush1.msra.mxu1 %v2466_v20  ;;  %v3033_v19 = vld [vmem:[#allocation12_spill] sm:$0xff]  ;;  %v3034_v20 = vld [vmem:[#allocation13_spill] sm:$0xff] }
 0x567   :  { %1313 = vmatprep.subr.mxu0 %v2469_v17  ;;  %1384 = vmatprep.subr.mxu1 %v2472_v21  ;;  %v3035_v17 = vld [vmem:[#allocation14_spill] sm:$0xff]  ;;  %v3036_v21 = vld [vmem:[#allocation15_spill] sm:$0xff] }
 0x568   :  { %1314 = vmatpush1.msra.mxu0 %v2475_v22  ;;  %1385 = vmatpush1.msra.mxu1 %v2478_v23  ;;  %v3037_v22 = vld [vmem:[#allocation16_spill] sm:$0xff]  ;;  %v3038_v23 = vld [vmem:[#allocation17_spill] sm:$0xff] }
 0x569   :  { %1315 = vmatprep.subr.mxu0 %v2481_v24  ;;  %1386 = vmatprep.subr.mxu1 %v2484_v25  ;;  %v3039_v24 = vld [vmem:[#allocation18_spill] sm:$0xff]  ;;  %v3040_v25 = vld [vmem:[#allocation19_spill] sm:$0xff] }
 0x56a   :  { %1316 = vmatpush1.msra.mxu0 %v2487_v26  ;;  %1387 = vmatpush1.msra.mxu1 %v2490_v27  ;;  %v3041_v26 = vld [vmem:[#allocation20_spill] sm:$0xff]  ;;  %v3042_v27 = vld [vmem:[#allocation21_spill] sm:$0xff] }
 0x56b   :  { %1317 = vmatprep.subr.mxu0 %v2493_v28  ;;  %1388 = vmatprep.subr.mxu1 %v2496_v29  ;;  %v3043_v28 = vld [vmem:[#allocation22_spill] sm:$0xff]  ;;  %v3044_v29 = vld [vmem:[#allocation23_spill] sm:$0xff] }
 0x56c   :  { %1318 = vmatpush1.msra.mxu0 %v2499_v30  ;;  %1389 = vmatpush1.msra.mxu1 %v2502_v31  ;;  %v3045_v30 = vld [vmem:[#allocation24_spill] sm:$0xff]  ;;  %v3046_v31 = vld [vmem:[#allocation25_spill] sm:$0xff] }
 0x56d   :  { %1319 = vmatprep.subr.mxu0 %v2505_v32  ;;  %1390 = vmatprep.subr.mxu1 %v2508_v33  ;;  %v3047_v32 = vld [vmem:[#allocation26_spill] sm:$0xff]  ;;  %v3048_v33 = vld [vmem:[#allocation27_spill] sm:$0xff] }
 0x56e   :  { %1320 = vmatpush1.msra.mxu0 %v2511_v34  ;;  %1391 = vmatpush1.msra.mxu1 %v2514_v36  ;;  %v3049_v34 = vld [vmem:[#allocation28_spill] sm:$0xff]  ;;  %v3050_v36 = vld [vmem:[#allocation29_spill] sm:$0xff] }
 0x56f   :  { %1321 = vmatprep.subr.mxu0 %v2517_v39  ;;  %1392 = vmatprep.subr.mxu1 %v2520_v41  ;;  %v3051_v39 = vmov 0.0   ;;  %v3052_v41 = vld [vmem:[#allocation30_spill] sm:$0xff] }
 0x570   :  { %1322 = vmatpush1.msra.mxu0 %v2523_v43  ;;  %1393 = vmatpush1.msra.mxu1 %v2526_v44  ;;  %v1121_v43 = vpop.permute.xlu0 %1120  ;;  %v3053_v44 = vld [vmem:[#allocation34_spill] sm:$0xff] }
 0x571   :  { %1323 = vmatprep.subr.mxu0 %v2529_v45  ;;  %1394 = vmatprep.subr.mxu1 %v2532_v46  ;;  %v1123_v45 = vmul.f32 %v1121_v43, %v3053_v44  ;;  %v3054_v46 = vld [vmem:[#allocation8_spill] sm:$0xff] }
 0x572   :  { %1324 = vmatpush1.msra.mxu0 %v2535_v48  ;;  %1395 = vmatpush1.msra.mxu1 %v2538_v50  ;;  %v1124_v48 = vmul.f32 %v1121_v43, %v3054_v46 }
 0x573   :  { %1325 = vmatprep.subr.mxu0 %v2541_v51  ;;  %1396 = vmatprep.subr.mxu1 %v2544_v52  ;;  %v1127_v50 = vadd.f32 %v1123_v45, %v2978_v1  ;;  %v3055_v52 = vld [vmem:[#allocation35_spill] sm:$0xff] }
 0x574   :  { %1326 = vmatpush1.msra.mxu0 %v2547_v53  ;;  %1397 = vmatpush1.msra.mxu1 %v2550_v56  ;;  %v1125_v53 = vmul.f32 %v1121_v43, %v3055_v52 }
 0x575   :  { %1327 = vmatprep.subr.mxu0 %v2553_v11  ;;  %1398 = vmatprep.subr.mxu1 %v2556_v4  ;;  %v3056_v11 = vld [vmem:[#allocation9_spill] sm:$0xff] }
 0x576   :  { %1328 = vmatpush1.msra.mxu0 %v2559_v9  ;;  %1399 = vmatpush1.msra.mxu1 %v2562_v62  ;;  %v1128_v4 = vadd.f32 %v1124_v48, %v3056_v11 }
 0x577   :  { %1329 = vmatprep.subr.mxu0 %v2565_v7  ;;  %1400 = vmatprep.subr.mxu1 %v2568_v6 }
 0x578   :  { %1330 = vmatpush1.msra.mxu0 %v2571_v0  ;;  %1401 = vmatpush1.msra.mxu1 %v2574_v57  ;;  %v1129_v0 = vadd.f32 %v1125_v53, %v2123_v5 }
 0x579   :  { %1331 = vmatprep.subr.mxu0 %v2577_v61  ;;  %1402 = vmatprep.subr.mxu1 %v2580_v54  ;;  %v1126_v61 = vmul.f32 %v1121_v43, %v2119_v12 }
 0x57a   :  { %1332 = vmatpush1.msra.mxu0 %v3030_v47  ;;  %1403 = vmatpush1.msra.mxu1 %v3031_v49 }
 0x57b   :  { %1333 = vmatprep.subr.mxu0 %v3032_v63  ;;  %1404 = vmatprep.subr.mxu1 %v3033_v19  ;;  %v1130_v14 = vadd.f32 %v1126_v61, %v2128_v2  ;;  %v1493_v19 = vld [vmem:[#allocation4 + $0x78] sm:$0xff] }
 0x57c   :  { %1334 = vmatpush1.msra.mxu0 %v3034_v20  ;;  %1405 = vmatpush1.msra.mxu1 %v3035_v17  ;;  %v1492_v20 = vld [vmem:[#allocation4 + $0x70] sm:$0xff]  ;;  %v1490_v17 = vld [vmem:[#allocation4 + $0x60] sm:$0xff] }
 0x57d   :  { %1335 = vmatprep.subr.mxu0 %v3036_v21  ;;  %1406 = vmatprep.subr.mxu1 %v3037_v22  ;;  %v1489_v21 = vld [vmem:[#allocation4 + $0x58] sm:$0xff]  ;;  %v1488_v22 = vld [vmem:[#allocation4 + $0x50] sm:$0xff] }
 0x57e   :  { %1336 = vmatpush1.msra.mxu0 %v3038_v23  ;;  %1407 = vmatpush1.msra.mxu1 %v3039_v24  ;;  %v1487_v23 = vld [vmem:[#allocation4 + $0x48] sm:$0xff]  ;;  %v1486_v24 = vld [vmem:[#allocation4 + $0x40] sm:$0xff] }
 0x57f   :  { %1337 = vmatprep.subr.mxu0 %v3040_v25  ;;  %1408 = vmatprep.subr.mxu1 %v3041_v26  ;;  %v1485_v25 = vld [vmem:[#allocation4 + $0x38] sm:$0xff]  ;;  %v1484_v26 = vld [vmem:[#allocation4 + $0x30] sm:$0xff] }
 0x580   :  { %1338 = vmatpush1.msra.mxu0 %v3042_v27  ;;  %1409 = vmatpush1.msra.mxu1 %v3043_v28  ;;  %v1483_v27 = vld [vmem:[#allocation4 + $0x28] sm:$0xff]  ;;  %v1482_v28 = vld [vmem:[#allocation4 + $0x20] sm:$0xff] }
 0x581   :  { %1339 = vmatprep.subr.mxu0 %v3044_v29  ;;  %1410 = vmatprep.subr.mxu1 %v3045_v30  ;;  %v1481_v29 = vld [vmem:[#allocation4 + $0x18] sm:$0xff]  ;;  %v1480_v30 = vld [vmem:[#allocation4 + $0x10] sm:$0xff] }
 0x582   :  { %1340 = vmatpush1.msra.mxu0 %v3046_v31  ;;  %1411 = vmatpush1.msra.mxu1 %v3047_v32  ;;  %v1479_v31 = vld [vmem:[#allocation4 + $0x8] sm:$0xff]  ;;  %v1478_v32 = vld [vmem:[#allocation4] sm:$0xff] }
 0x583   :  { %1341 = vmatprep.subr.mxu0 %v3048_v33  ;;  %1412 = vmatprep.subr.mxu1 %v3049_v34  ;;  %v1301_v33 = vpop.permute.xlu1 %1300 }
 0x584   :  { %1342 = vmatpush1.msra.mxu0 %v3050_v36  ;;  %1375 = vmatprep.mubr.f32.mxu0 %v3051_v39  ;;  %v1303_v34 = vmul.f32 %v1301_v33, %v3053_v44  ;;  %v1304_v36 = vmul.f32 %v1301_v33, %v3054_v46  ;;  %v1305_v45 = vmul.f32 %v1301_v33, %v3055_v52 }
 0x585   :  { %1413 = vmatpush1.msra.mxu1 %v3052_v41  ;;  %1446 = vmatprep.mubr.f32.mxu1 %v3051_v39  ;;  %v1306_v44 = vmul.f32 %v1301_v33, %v2119_v12 }
 0x586   :  { %1596 = vmatprep.subr.mxu0 %v3051_v39  ;;  %v1307_v41 = vadd.f32 %v1303_v34, %v2978_v1 }
 0x587   :  { %v1310_v1 = vadd.f32 %v1306_v44, %v2128_v2 }
 0x625   :  { %v1197_v51 = vpop.f32.mrf.mxu0  ;;  %v1268_v6 = vpop.f32.mrf.mxu1 }
 0x626   :  { %v1273_v56 = vadd.f32 %v1197_v51, %v1127_v50  ;;  %v1275_v54 = vadd.f32 %v1268_v6, %v1129_v0  ;;  %v1308_v50 = vadd.f32 %v1304_v36, %v3056_v11 }
 0x627   :  { %v1199_v9 = vpop.f32.mrf.mxu0  ;;  %v1270_v38 = vpop.f32.mrf.mxu1 }
 0x628   :  { %v1277_v62 = vmul.f32 0.5, %v1273_v56  ;;  %v1274_v7 = vadd.f32 %v1199_v9, %v1128_v4  ;;  %v1276_v16 = vadd.f32 %v1270_v38, %v1130_v14 }
 0x62a   :  { %1700 = vtanh.f32 %v1277_v62  ;;  %v1278_v57 = vmul.f32 0.5, %v1274_v7  ;;  %v1280_v18 = vmul.f32 0.5, %v1276_v16 }
 0x62c   :  { %1702 = vtanh.f32 %v1278_v57 }
 0x62d   :  { %1704 = vtanh.f32 %v1275_v54 }
 0x62e   :  { %1706 = vtanh.f32 %v1280_v18 }
 0x637   :  { %v1701_v13 = vpop.eup %1700 }
 0x638   :  { %v1285_v58 = vmul.f32 0.5, %v1701_v13 }
 0x639   :  { %v1703_v55 = vpop.eup %1702 }
 0x63a   :  { %v1289_v8 = vadd.f32 0.5, %v1285_v58  ;;  %v1286_v15 = vmul.f32 0.5, %v1703_v55  ;;  %v1705_v10 = vpop.eup %1704  ;;  %v1578_v55 = vld [vmem:[%s2778_s5] ss:$0 sm:$0xff] }
 0x63b   :  { %v1707_v40 = vpop.eup %1706 }
 0x63c   :  { %v1290_v35 = vadd.f32 0.5, %v1286_v15  ;;  %v1294_v59 = vmul.f32 %v1705_v10, %v1289_v8  ;;  %v1288_v37 = vmul.f32 0.5, %v1707_v40 }
 0x63e   :  { %v1293_v3 = vmul.f32 %v1290_v35, %v2662_v60  ;;  %v1292_v47 = vadd.f32 0.5, %v1288_v37  ;;  %v1491_v60 = vld [vmem:[#allocation4 + $0x68] sm:$0xff] }
 0x640   :  { %v2739_v42 = vadd.f32 %v1294_v59, %v1293_v3 }
 0x642   :  { %1708 = vtanh.f32 %v2739_v42 }
 0x64f   :  { %v1709_v49 = vpop.eup %1708 }
 0x650   :  { %v1297_v63 = vmul.f32 %v1709_v49, %v1292_v47 }
 0x652   :  { %1376 = vmatmul.mubr.f32.vlgmr.msra.gmra.mxu0 %v1297_v63  ;;  %1447 = vmatmul.mubr.f32.vlgmr.msra.gmra.mxu1 %v1297_v63 }
 0x653   :  { %1597 = vmatpush3.msra.mxu0 %v1493_v19  ;;  %1628 = vmatprep.mubr.msk.f32.mxu0 %vm1836_vm0, %v3051_v39 }
 0x654   :  { %1598 = vmatprep.subr.mxu0 %v3051_v39 }
 0x655   :  { %1599 = vmatpush3.msra.mxu0 %v1492_v20 }
 0x656   :  { %1600 = vmatprep.subr.mxu0 %v3051_v39 }
 0x657   :  { %1601 = vmatpush3.msra.mxu0 %v1491_v60 }
 0x658   :  { %1602 = vmatprep.subr.mxu0 %v3051_v39 }
 0x659   :  { %1603 = vmatpush3.msra.mxu0 %v1490_v17 }
 0x65a   :  { %1604 = vmatprep.subr.mxu0 %v3051_v39 }
 0x65b   :  { %1605 = vmatpush3.msra.mxu0 %v1489_v21 }
 0x65c   :  { %1606 = vmatprep.subr.mxu0 %v3051_v39 }
 0x65d   :  { %1607 = vmatpush3.msra.mxu0 %v1488_v22 }
 0x65e   :  { %1608 = vmatprep.subr.mxu0 %v3051_v39 }
 0x65f   :  { %1609 = vmatpush3.msra.mxu0 %v1487_v23 }
 0x660   :  { %1610 = vmatprep.subr.mxu0 %v3051_v39 }
 0x661   :  { %1611 = vmatpush3.msra.mxu0 %v1486_v24 }
 0x662   :  { %1612 = vmatprep.subr.mxu0 %v3051_v39 }
 0x663   :  { %1613 = vmatpush3.msra.mxu0 %v1485_v25 }
 0x664   :  { %1614 = vmatprep.subr.mxu0 %v3051_v39 }
 0x665   :  { %1615 = vmatpush3.msra.mxu0 %v1484_v26 }
 0x666   :  { %1616 = vmatprep.subr.mxu0 %v3051_v39 }
 0x667   :  { %1617 = vmatpush3.msra.mxu0 %v1483_v27 }
 0x668   :  { %1618 = vmatprep.subr.mxu0 %v3051_v39 }
 0x669   :  { %1619 = vmatpush3.msra.mxu0 %v1482_v28 }
 0x66a   :  { %1620 = vmatprep.subr.mxu0 %v3051_v39 }
 0x66b   :  { %1621 = vmatpush3.msra.mxu0 %v1481_v29 }
 0x66c   :  { %1622 = vmatprep.subr.mxu0 %v3051_v39 }
 0x66d   :  { %1623 = vmatpush3.msra.mxu0 %v1480_v30 }
 0x66e   :  { %1624 = vmatprep.subr.mxu0 %v3051_v39 }
 0x66f   :  { %1625 = vmatpush3.msra.mxu0 %v1479_v31 }
 0x670   :  { %1626 = vmatprep.subr.mxu0 %v3051_v39  ;;  %v1309_v39 = vadd.f32 %v1305_v45, %v2123_v5 }
 0x671   :  { %1627 = vmatpush3.msra.mxu0 %v1478_v32 }
 0x712   :  { %v1377_v43 = vpop.f32.mrf.mxu0  ;;  %v1448_v4 = vpop.f32.mrf.mxu1 }
 0x713   :  { %v1453_v48 = vadd.f32 %v1377_v43, %v1307_v41  ;;  %v1455_v62 = vadd.f32 %v1448_v4, %v1309_v39 }
 0x714   :  { %v1379_v51 = vpop.f32.mrf.mxu0  ;;  %v1450_v46 = vpop.f32.mrf.mxu1 }
 0x715   :  { %v1457_v53 = vmul.f32 0.5, %v1453_v48  ;;  %v1454_v56 = vadd.f32 %v1379_v51, %v1308_v50  ;;  %v1456_v52 = vadd.f32 %v1450_v46, %v1310_v1 }
 0x717   :  { %1710 = vtanh.f32 %v1457_v53  ;;  %v1458_v9 = vmul.f32 0.5, %v1454_v56  ;;  %v1460_v7 = vmul.f32 0.5, %v1456_v52 }
 0x719   :  { %1712 = vtanh.f32 %v1458_v9 }
 0x71a   :  { %1714 = vtanh.f32 %v1455_v62 }
 0x71b   :  { %1716 = vtanh.f32 %v1460_v7 }
 0x724   :  { %v1711_v6 = vpop.eup %1710 }
 0x725   :  { %v1465_v11 = vmul.f32 0.5, %v1711_v6 }
 0x726   :  { %v1713_v0 = vpop.eup %1712 }
 0x727   :  { %v1469_v57 = vadd.f32 0.5, %v1465_v11  ;;  %v1466_v61 = vmul.f32 0.5, %v1713_v0  ;;  %v1715_v38 = vpop.eup %1714 }
 0x728   :  { %v1717_v16 = vpop.eup %1716 }
 0x729   :  { %v1470_v54 = vadd.f32 0.5, %v1466_v61  ;;  %v1474_v14 = vmul.f32 %v1715_v38, %v1469_v57  ;;  %v1468_v18 = vmul.f32 0.5, %v1717_v16 }
 0x72b   :  { %v1473_v5 = vmul.f32 %v1470_v54, %v2739_v42  ;;  %v1472_v13 = vadd.f32 0.5, %v1468_v18 }
 0x72d   :  { %v1475_v12 = vadd.f32 %v1474_v14, %v1473_v5 }
 0x72f   :  { %1718 = vtanh.f32 %v1475_v12 }
 0x73c   :  { %v1719_v58 = vpop.eup %1718 }
 0x73d   :  { %v1477_v2 = vmul.f32 %v1719_v58, %v1472_v13 }
 0x73f   :  { %1629 = vmatmul.mubr.f32.vlgmr.msra.gmra.mxu0 %v1477_v2 }
 0x7ff   :  { %v1567_v8 = vpop.f32.mrf.mxu0 }
 0x800   :  { %v1568_v15 = vadd.f32 %v1578_v55, %v1567_v8 }
 0x801   :  { %v1630_v35 = vpop.f32.mrf.mxu0 }
 0x802   :  { %1571 = vst [vmem:[%s2779_s6] sm:$0xff] %v1568_v15 }
 0x803   :  { %1576 = vsyncpa [#allocation3], 1 }
 0x804   :  { %1577 = vsyncpa [#allocation5], 1 }

</bundles_post_ra>
